<compile_context>
chip_gen: v7x
topology: tpu7x:2x2x1
jax: 0.10.0
libtpu: 0.0.40
codegen_flags: <defaults>
</compile_context>

<pallas_src>
import math

import jax
import jax.numpy as jnp
import numpy as np
from jax import lax
from jax.experimental import pallas as pl
from jax.experimental.pallas import tpu as pltpu

_NEG_MIN = float(jnp.finfo(jnp.float32).min)
_MIB = 1024 * 1024


def _pick_seq_tile(T):
    for tq in (256, 128, 64, 32, 16, 8):
        if T % tq == 0:
            return tq
    return T


def _vmem_limit(est_bytes):
    # Sized to the actual footprint (+50% headroom); clamped to stay sane on
    # v7x (64 MiB physical) while still raising the default scoped limit.
    return int(min(96 * _MIB, max(32 * _MIB, int(est_bytes * 1.5))))


def _weight_spec(shape, single_buffer):
    # Constant index_map -> block DMA'd once, stays resident across the grid.
    # Buffered(1) drops the useless second pipeline buffer (halves resident
    # weight VMEM -- matters on v7x).
    index_map = lambda *_: (0,) * len(shape)
    if single_buffer:
        return pl.BlockSpec(shape, index_map, pipeline_mode=pl.Buffered(1))
    return pl.BlockSpec(shape, index_map)


def _make_qkv_kernel(num_heads, head_dim):
    H, D = num_heads, head_dim

    def qkv_kernel(x_ref, wq_ref, bq_ref, wk_ref, bk_ref, wv_ref, bv_ref,
                   q_ref, k_ref, v_ref):
        x = x_ref[0]                                      # (TQ, E) bf16

        def proj(w_ref, b_ref):
            # y = x @ W.T with W stored (E_out, E_in): contract dim 1 of both,
            # bf16 operands, fp32 accumulation on the MXU.
            y = lax.dot_general(
                x, w_ref[...],
                dimension_numbers=(((1,), (1,)), ((), ())),
                preferred_element_type=jnp.float32)
            return (y + b_ref[...]).astype(jnp.bfloat16)  # (TQ, E)

        q = proj(wq_ref, bq_ref)   # scaling already folded into wq/bq
        k = proj(wk_ref, bk_ref)
        v = proj(wv_ref, bv_ref)

        # Head-split repack (TQ, E) -> (H, TQ, D).  Static offsets -> aligned
        # slices; per-iteration temporaries are a single (TQ, D) tile, so no
        # live-range blow-up (the big per-head temporaries of v2 are gone --
        # the head loop of the attention itself is now a grid axis).
        for h in range(H):
            sl = slice(h * D, (h + 1) * D)
            q_ref[0, h] = q[:, sl]
            k_ref[0, h] = k[:, sl]
            v_ref[0, h] = v[:, sl]

    return qkv_kernel


def _make_attn_kernel(head_dim, output_attentions):
    D = head_dim

    def attn_kernel(q_ref, k_ref, v_ref, mask_ref, wo_ref, bo_ref, *out_refs):
        if output_attentions:
            out_ref, aw_ref = out_refs
        else:
            (out_ref,) = out_refs
            aw_ref = None

        h = pl.program_id(2)
        q = q_ref[0, 0]                                   # (TQ, D) bf16 (pre-scaled)
        k = k_ref[0, 0]                                   # (T,  D) bf16
        v = v_ref[0, 0]                                   # (T,  D) bf16

        # scores = q @ k^T without materializing k^T; bf16 in / fp32 out.
        scores = lax.dot_general(
            q, k, dimension_numbers=(((1,), (1,)), ((), ())),
            preferred_element_type=jnp.float32)           # (TQ, T)
        scores = jnp.maximum(scores + mask_ref[0, 0], _NEG_MIN)

        # Softmax in fp32.  Exact reciprocal when weights are returned to the
        # caller (rows sum to ~1); EUP-approx otherwise (denominator only
        # feeds the value matmul).
        m = jnp.max(scores, axis=-1, keepdims=True)
        e = jnp.exp(scores - m)
        s = jnp.sum(e, axis=-1, keepdims=True)
        probs = e * pl.reciprocal(s, approx=not output_attentions)
        if output_attentions:
            aw_ref[0, 0] = probs
        # dropout p=0.0 / eval mode -> identity.
        # TODO(synk): layer_head_mask (None in this path) is not modeled.

        # ctx = probs @ v (bf16 in / fp32 accumulate).
        ctx = jnp.dot(probs.astype(jnp.bfloat16), v,
                      preferred_element_type=jnp.float32)  # (TQ, D)

        # Head h's contribution to out_proj: ctx_h @ Wo.T[h*D:(h+1)*D, :].
        # wo_ref is Wo.T (E_in, E_out) so this is a sublane-dim slice.
        off = pl.multiple_of(h * D, D)
        w_h = wo_ref[pl.ds(off, D), :]                      # (D, E) bf16
        contrib = jnp.dot(ctx.astype(jnp.bfloat16), w_h,
                          preferred_element_type=jnp.float32)  # (TQ, E)

        @pl.when(h == 0)
        def _():
            out_ref[0] = contrib + bo_ref[...]

        @pl.when(h != 0)
        def _():
            out_ref[0] = out_ref[0] + contrib

    return attn_kernel


def opt_quantized_attention(hidden_states, params, attention_mask,
                            num_heads, output_attentions=False,
                            seq_tile=None, single_buffer_weights=True):
    """hidden_states: [B, T, E] fp32; attention_mask: [B, 1, T, T] fp32."""
    B, T, E = hidden_states.shape
    H = num_heads
    D = E // H
    if H * D != E:
        raise ValueError("embed_dim must be divisible by num_heads")
    if attention_mask.shape != (B, 1, T, T):
        raise ValueError("attention_mask must be (B, 1, T, T)")

    TQ = seq_tile if seq_tile is not None else _pick_seq_tile(T)
    assert T % TQ == 0
    NQ = T // TQ
    scaling = D ** (-0.5)

    wq, bq = params["q_proj"]   # w: (E_out, E_in) like nn.Linear, b: (E,)
    wk, bk = params["k_proj"]
    wv, bv = params["v_proj"]
    wo, bo = params["out_proj"]

    # One-time host-side prep: fold scaling into q_proj, bf16 weights,
    # transpose out_proj so per-head rows are sublane slices.
    wq_b = (wq * scaling).astype(jnp.bfloat16)
    wk_b = wk.astype(jnp.bfloat16)
    wv_b = wv.astype(jnp.bfloat16)
    wo_t = wo.T.astype(jnp.bfloat16)                       # (E_in, E_out)
    bq2 = (bq * scaling).reshape(1, E).astype(jnp.float32)
    bk2 = bk.reshape(1, E).astype(jnp.float32)
    bv2 = bv.reshape(1, E).astype(jnp.float32)
    bo2 = bo.reshape(1, E).astype(jnp.float32)
    x_b = hidden_states.astype(jnp.bfloat16)
    mask_f = attention_mask.astype(jnp.float32)

    def run_qkv(single_buf):
        wbuf = 1 if single_buf else 2
        est = (3 * E * E * 2 * wbuf        # resident bf16 projection weights
               + 3 * 2 * E * 4             # biases (double-buffered)
               + 2 * TQ * E * 2            # x tile (bf16, double-buffered)
               + 3 * 2 * TQ * E * 2        # q/k/v out tiles (bf16, x2)
               + 6 * TQ * E * 4)           # live intermediates
        wspec = _weight_spec((E, E), single_buf)
        bspec = pl.BlockSpec((1, E), lambda *_: (0, 0))
        qkv_out_spec = pl.BlockSpec((1, H, TQ, D), lambda b, t: (b, 0, t, 0))
        return pl.pallas_call(
            _make_qkv_kernel(H, D),
            out_shape=(jax.ShapeDtypeStruct((B, H, T, D), jnp.bfloat16),) * 3,
            grid_spec=pltpu.PrefetchScalarGridSpec(
                num_scalar_prefetch=0,
                grid=(B, NQ),
                in_specs=[
                    pl.BlockSpec((1, TQ, E), lambda b, t: (b, t, 0)),
                    wspec, bspec,          # q_proj
                    wspec, bspec,          # k_proj
                    wspec, bspec,          # v_proj
                ],
                out_specs=(qkv_out_spec, qkv_out_spec, qkv_out_spec),
            ),
            compiler_params=pltpu.CompilerParams(
                dimension_semantics=("parallel", "parallel"),
                vmem_limit_bytes=_vmem_limit(est)),
        )(x_b, wq_b, bq2, wk_b, bk2, wv_b, bv2)

    def run_attn(single_buf, q_hm, k_hm, v_hm):
        wbuf = 1 if single_buf else 2
        est = (E * E * 2 * wbuf            # resident out_proj weight
               + 2 * E * 4                 # bias
               + 2 * TQ * D * 2            # q tile
               + 2 * 2 * T * D * 2         # k + v tiles
               + 2 * TQ * T * 4            # mask tile
               + 2 * TQ * E * 4            # output tile
               + (2 * TQ * T * 4 if output_attentions else 0)
               + 4 * TQ * T * 4)           # scores/probs temporaries
        wspec = _weight_spec((E, E), single_buf)
        bspec = pl.BlockSpec((1, E), lambda *_: (0, 0))
        out_spec = pl.BlockSpec((1, TQ, E), lambda b, t, h: (b, t, 0))
        in_specs = [
            pl.BlockSpec((1, 1, TQ, D), lambda b, t, h: (b, h, t, 0)),   # q
            pl.BlockSpec((1, 1, T, D), lambda b, t, h: (b, h, 0, 0)),    # k
            pl.BlockSpec((1, 1, T, D), lambda b, t, h: (b, h, 0, 0)),    # v
            pl.BlockSpec((1, 1, TQ, T), lambda b, t, h: (b, 0, t, 0)),   # mask
            wspec, bspec,                                                # out_proj
        ]
        if output_attentions:
            out_specs = (out_spec,
                         pl.BlockSpec((1, 1, TQ, T), lambda b, t, h: (b, h, t, 0)))
            out_shape = (jax.ShapeDtypeStruct((B, T, E), jnp.float32),
                         jax.ShapeDtypeStruct((B, H, T, T), jnp.float32))
        else:
            out_specs = out_spec
            out_shape = jax.ShapeDtypeStruct((B, T, E), jnp.float32)
        return pl.pallas_call(
            _make_attn_kernel(D, output_attentions),
            out_shape=out_shape,
            grid_spec=pltpu.PrefetchScalarGridSpec(
                num_scalar_prefetch=0,
                grid=(B, NQ, H),
                in_specs=in_specs,
                out_specs=out_specs,
            ),
            compiler_params=pltpu.CompilerParams(
                dimension_semantics=("parallel", "parallel", "arbitrary"),
                vmem_limit_bytes=_vmem_limit(est)),
        )(q_hm, k_hm, v_hm, mask_f, wo_t, bo2)

    def run_all(single_buf):
        q_hm, k_hm, v_hm = run_qkv(single_buf)
        return run_attn(single_buf, q_hm, k_hm, v_hm)

    if single_buffer_weights:
        try:
            result = run_all(True)
        except Exception:
            # This JAX build rejects pl.Buffered(1) on the main pipeline; fall
            # back to default double buffering (weights are still bf16 with a
            # constant index_map, so they are fetched once and stay resident).
            result = run_all(False)
    else:
        result = run_all(False)

    if output_attentions:
        attn_out, attn_w = result
        return attn_out, attn_w
    return result, None


def reference_attention(hidden_states, params, attention_mask, num_heads):
    """Pure-JAX reference mirroring the PyTorch forward (self-attn path)."""
    B, T, E = hidden_states.shape
    H = num_heads
    D = E // H
    wq, bq = params["q_proj"]
    wk, bk = params["k_proj"]
    wv, bv = params["v_proj"]
    wo, bo = params["out_proj"]
    scaling = D ** (-0.5)

    def shape(t):  # (B, T, E) -> (B*H, T, D)
        return t.reshape(B, T, H, D).transpose(0, 2, 1, 3).reshape(B * H, T, D)

    q = shape((hidden_states @ wq.T + bq) * scaling)
    k = shape(hidden_states @ wk.T + bk)
    v = shape(hidden_states @ wv.T + bv)

    attn_weights = jnp.einsum("btd,bsd->bts", q, k)
    attn_weights = attn_weights.reshape(B, H, T, T) + attention_mask
    attn_weights = jnp.maximum(attn_weights, jnp.finfo(jnp.float32).min)
    attn_weights = jax.nn.softmax(attn_weights, axis=-1)
    attn_probs = attn_weights.reshape(B * H, T, T)

    attn_out = jnp.einsum("bts,bsd->btd", attn_probs, v)
    attn_out = attn_out.reshape(B, H, T, D).transpose(0, 2, 1, 3).reshape(B, T, E)
    attn_out = attn_out @ wo.T + bo
    return attn_out, attn_weights


if __name__ == "__main__":
    # Small shapes consistent with the module: batch=2, seq=8, embed_dim=32, heads=4.
    B, T, E, H = 2, 8, 32, 4

    key = jax.random.PRNGKey(0)
    keys = jax.random.split(key, 10)

    def linear_params(kw, kb, fan_in):
        bound = 1.0 / math.sqrt(fan_in)
        w = jax.random.uniform(kw, (E, E), jnp.float32, -bound, bound)
        b = jax.random.uniform(kb, (E,), jnp.float32, -bound, bound)
        return w, b

    params = {
        "q_proj": linear_params(keys[0], keys[1], E),
        "k_proj": linear_params(keys[2], keys[3], E),
        "v_proj": linear_params(keys[4], keys[5], E),
        "out_proj": linear_params(keys[6], keys[7], E),
    }

    hidden_states = jax.random.normal(keys[8], (B, T, E), jnp.float32)

    # Causal attention mask [B, 1, T, T] (0 where allowed, finfo.min where masked).
    neg = jnp.finfo(jnp.float32).min
    causal = jnp.tril(jnp.ones((T, T), jnp.float32))
    attention_mask = jnp.where(causal[None, None] > 0, 0.0, neg).astype(jnp.float32)
    attention_mask = jnp.broadcast_to(attention_mask, (B, 1, T, T))

    attn_out, attn_w = opt_quantized_attention(hidden_states, params,
                                               attention_mask, H,
                                               output_attentions=True)
    jax.block_until_ready((attn_out, attn_w))

    ref_out, ref_w = reference_attention(hidden_states, params,
                                         attention_mask, H)
    jax.block_until_ready((ref_out, ref_w))

    np.testing.assert_allclose(np.asarray(attn_out), np.asarray(ref_out),
                               rtol=2e-2, atol=2e-2)
    np.testing.assert_allclose(np.asarray(attn_w), np.asarray(ref_w),
                               rtol=2e-2, atol=2e-2)

    # Bandwidth-saving path: no attention-weights writeback, approx softmax denom.
    attn_out2, none_w = opt_quantized_attention(hidden_states, params,
                                                attention_mask, H,
                                                output_attentions=False)
    jax.block_until_ready(attn_out2)
    assert none_w is None
    np.testing.assert_allclose(np.asarray(attn_out2), np.asarray(ref_out),
                               rtol=2e-2, atol=2e-2)

    print("KERNEL_OK")
</pallas_src>

<mosaic_0001>
module attributes {stable_mosaic.version = 11 : i64} {
  func.func @qkv_kernel(%arg0: i32, %arg1: i32, %arg2: memref<1x8x32xbf16, #tpu.memory_space<vmem>>, %arg3: memref<32x32xbf16, #tpu.memory_space<vmem>>, %arg4: memref<1x32xf32, #tpu.memory_space<vmem>>, %arg5: memref<32x32xbf16, #tpu.memory_space<vmem>>, %arg6: memref<1x32xf32, #tpu.memory_space<vmem>>, %arg7: memref<32x32xbf16, #tpu.memory_space<vmem>>, %arg8: memref<1x32xf32, #tpu.memory_space<vmem>>, %arg9: memref<1x4x8x8xbf16, #tpu.memory_space<vmem>>, %arg10: memref<1x4x8x8xbf16, #tpu.memory_space<vmem>>, %arg11: memref<1x4x8x8xbf16, #tpu.memory_space<vmem>>) attributes {dimension_semantics = [#tpu.dimension_semantics<parallel>, #tpu.dimension_semantics<parallel>], iteration_bounds = array<i64: 2, 1>, scalar_prefetch = 0 : i64, scratch_operands = 0 : i64, tpu.core_type = #tpu.core_type<tc>, window_params = [{transform_indices = @transform_0, window_bounds = array<i64: 1, 8, 32>}, {pipeline_mode = #tpu.pipeline_mode<synchronous>, transform_indices = @transform_1, window_bounds = array<i64: 32, 32>}, {pipeline_mode = #tpu.pipeline_mode<synchronous>, transform_indices = @transform_2, window_bounds = array<i64: 1, 32>}, {pipeline_mode = #tpu.pipeline_mode<synchronous>, transform_indices = @transform_3, window_bounds = array<i64: 32, 32>}, {pipeline_mode = #tpu.pipeline_mode<synchronous>, transform_indices = @transform_4, window_bounds = array<i64: 1, 32>}, {pipeline_mode = #tpu.pipeline_mode<synchronous>, transform_indices = @transform_5, window_bounds = array<i64: 32, 32>}, {pipeline_mode = #tpu.pipeline_mode<synchronous>, transform_indices = @transform_6, window_bounds = array<i64: 1, 32>}, {transform_indices = @transform_7, window_bounds = array<i64: 1, 4, 8, 8>}, {transform_indices = @transform_8, window_bounds = array<i64: 1, 4, 8, 8>}, {transform_indices = @transform_9, window_bounds = array<i64: 1, 4, 8, 8>}]} {
    %c0 = arith.constant 0 : index
    %c0_0 = arith.constant 0 : index
    %c0_1 = arith.constant 0 : index
    %0 = vector.load %arg2[%c0, %c0_0, %c0_1] : memref<1x8x32xbf16, #tpu.memory_space<vmem>>, vector<1x8x32xbf16>
    %1 = vector.shape_cast %0 : vector<1x8x32xbf16> to vector<8x32xbf16>
    %c0_2 = arith.constant 0 : index
    %c0_3 = arith.constant 0 : index
    %2 = vector.load %arg3[%c0_2, %c0_3] : memref<32x32xbf16, #tpu.memory_space<vmem>>, vector<32x32xbf16>
    %cst = arith.constant dense<0.000000e+00> : vector<8x32xf32>
    %3 = tpu.matmul %1, %2, %cst {dimension_numbers = #tpu.dot_dimension_numbers<[1], [1], [0], [0], [0, 0, 1, 0], [], []>} : vector<8x32xbf16>, vector<32x32xbf16>, vector<8x32xf32> -> vector<8x32xf32>
    %c0_4 = arith.constant 0 : index
    %c0_5 = arith.constant 0 : index
    %4 = vector.load %arg4[%c0_4, %c0_5] : memref<1x32xf32, #tpu.memory_space<vmem>>, vector<1x32xf32>
    %5 = vector.broadcast %4 : vector<1x32xf32> to vector<8x32xf32>
    %6 = arith.addf %3, %5 : vector<8x32xf32>
    %7 = arith.truncf %6 : vector<8x32xf32> to vector<8x32xbf16>
    %c0_6 = arith.constant 0 : index
    %c0_7 = arith.constant 0 : index
    %8 = vector.load %arg5[%c0_6, %c0_7] : memref<32x32xbf16, #tpu.memory_space<vmem>>, vector<32x32xbf16>
    %cst_8 = arith.constant dense<0.000000e+00> : vector<8x32xf32>
    %9 = tpu.matmul %1, %8, %cst_8 {dimension_numbers = #tpu.dot_dimension_numbers<[1], [1], [0], [0], [0, 0, 1, 0], [], []>} : vector<8x32xbf16>, vector<32x32xbf16>, vector<8x32xf32> -> vector<8x32xf32>
    %c0_9 = arith.constant 0 : index
    %c0_10 = arith.constant 0 : index
    %10 = vector.load %arg6[%c0_9, %c0_10] : memref<1x32xf32, #tpu.memory_space<vmem>>, vector<1x32xf32>
    %11 = vector.broadcast %10 : vector<1x32xf32> to vector<8x32xf32>
    %12 = arith.addf %9, %11 : vector<8x32xf32>
    %13 = arith.truncf %12 : vector<8x32xf32> to vector<8x32xbf16>
    %c0_11 = arith.constant 0 : index
    %c0_12 = arith.constant 0 : index
    %14 = vector.load %arg7[%c0_11, %c0_12] : memref<32x32xbf16, #tpu.memory_space<vmem>>, vector<32x32xbf16>
    %cst_13 = arith.constant dense<0.000000e+00> : vector<8x32xf32>
    %15 = tpu.matmul %1, %14, %cst_13 {dimension_numbers = #tpu.dot_dimension_numbers<[1], [1], [0], [0], [0, 0, 1, 0], [], []>} : vector<8x32xbf16>, vector<32x32xbf16>, vector<8x32xf32> -> vector<8x32xf32>
    %c0_14 = arith.constant 0 : index
    %c0_15 = arith.constant 0 : index
    %16 = vector.load %arg8[%c0_14, %c0_15] : memref<1x32xf32, #tpu.memory_space<vmem>>, vector<1x32xf32>
    %17 = vector.broadcast %16 : vector<1x32xf32> to vector<8x32xf32>
    %18 = arith.addf %15, %17 : vector<8x32xf32>
    %19 = arith.truncf %18 : vector<8x32xf32> to vector<8x32xbf16>
    %20 = vector.extract_strided_slice %7 {offsets = [0, 0], sizes = [8, 8], strides = [1, 1]} : vector<8x32xbf16> to vector<8x8xbf16>
    %c0_16 = arith.constant 0 : index
    %c0_17 = arith.constant 0 : index
    %c0_18 = arith.constant 0 : index
    %c0_19 = arith.constant 0 : index
    %21 = vector.load %arg9[%c0_16, %c0_17, %c0_18, %c0_19] : memref<1x4x8x8xbf16, #tpu.memory_space<vmem>>, vector<1x1x8x8xbf16>
    %22 = vector.shape_cast %21 : vector<1x1x8x8xbf16> to vector<8x8xbf16>
    %23 = vector.shape_cast %20 : vector<8x8xbf16> to vector<1x1x8x8xbf16>
    tpu.vector_store %arg9[%c0_16, %c0_17, %c0_18, %c0_19], %23 {strides = array<i32>} : memref<1x4x8x8xbf16, #tpu.memory_space<vmem>>, vector<1x1x8x8xbf16>,
    %24 = vector.extract_strided_slice %13 {offsets = [0, 0], sizes = [8, 8], strides = [1, 1]} : vector<8x32xbf16> to vector<8x8xbf16>
    %c0_20 = arith.constant 0 : index
    %c0_21 = arith.constant 0 : index
    %c0_22 = arith.constant 0 : index
    %c0_23 = arith.constant 0 : index
    %25 = vector.load %arg10[%c0_20, %c0_21, %c0_22, %c0_23] : memref<1x4x8x8xbf16, #tpu.memory_space<vmem>>, vector<1x1x8x8xbf16>
    %26 = vector.shape_cast %25 : vector<1x1x8x8xbf16> to vector<8x8xbf16>
    %27 = vector.shape_cast %24 : vector<8x8xbf16> to vector<1x1x8x8xbf16>
    tpu.vector_store %arg10[%c0_20, %c0_21, %c0_22, %c0_23], %27 {strides = array<i32>} : memref<1x4x8x8xbf16, #tpu.memory_space<vmem>>, vector<1x1x8x8xbf16>,
    %28 = vector.extract_strided_slice %19 {offsets = [0, 0], sizes = [8, 8], strides = [1, 1]} : vector<8x32xbf16> to vector<8x8xbf16>
    %c0_24 = arith.constant 0 : index
    %c0_25 = arith.constant 0 : index
    %c0_26 = arith.constant 0 : index
    %c0_27 = arith.constant 0 : index
    %29 = vector.load %arg11[%c0_24, %c0_25, %c0_26, %c0_27] : memref<1x4x8x8xbf16, #tpu.memory_space<vmem>>, vector<1x1x8x8xbf16>
    %30 = vector.shape_cast %29 : vector<1x1x8x8xbf16> to vector<8x8xbf16>
    %31 = vector.shape_cast %28 : vector<8x8xbf16> to vector<1x1x8x8xbf16>
    tpu.vector_store %arg11[%c0_24, %c0_25, %c0_26, %c0_27], %31 {strides = array<i32>} : memref<1x4x8x8xbf16, #tpu.memory_space<vmem>>, vector<1x1x8x8xbf16>,
    %32 = vector.extract_strided_slice %7 {offsets = [0, 8], sizes = [8, 8], strides = [1, 1]} : vector<8x32xbf16> to vector<8x8xbf16>
    %c0_28 = arith.constant 0 : index
    %c1 = arith.constant 1 : index
    %c0_29 = arith.constant 0 : index
    %c0_30 = arith.constant 0 : index
    %33 = vector.load %arg9[%c0_28, %c1, %c0_29, %c0_30] : memref<1x4x8x8xbf16, #tpu.memory_space<vmem>>, vector<1x1x8x8xbf16>
    %34 = vector.shape_cast %33 : vector<1x1x8x8xbf16> to vector<8x8xbf16>
    %35 = vector.shape_cast %32 : vector<8x8xbf16> to vector<1x1x8x8xbf16>
    tpu.vector_store %arg9[%c0_28, %c1, %c0_29, %c0_30], %35 {strides = array<i32>} : memref<1x4x8x8xbf16, #tpu.memory_space<vmem>>, vector<1x1x8x8xbf16>,
    %36 = vector.extract_strided_slice %13 {offsets = [0, 8], sizes = [8, 8], strides = [1, 1]} : vector<8x32xbf16> to vector<8x8xbf16>
    %c0_31 = arith.constant 0 : index
    %c1_32 = arith.constant 1 : index
    %c0_33 = arith.constant 0 : index
    %c0_34 = arith.constant 0 : index
    %37 = vector.load %arg10[%c0_31, %c1_32, %c0_33, %c0_34] : memref<1x4x8x8xbf16, #tpu.memory_space<vmem>>, vector<1x1x8x8xbf16>
    %38 = vector.shape_cast %37 : vector<1x1x8x8xbf16> to vector<8x8xbf16>
    %39 = vector.shape_cast %36 : vector<8x8xbf16> to vector<1x1x8x8xbf16>
    tpu.vector_store %arg10[%c0_31, %c1_32, %c0_33, %c0_34], %39 {strides = array<i32>} : memref<1x4x8x8xbf16, #tpu.memory_space<vmem>>, vector<1x1x8x8xbf16>,
    %40 = vector.extract_strided_slice %19 {offsets = [0, 8], sizes = [8, 8], strides = [1, 1]} : vector<8x32xbf16> to vector<8x8xbf16>
    %c0_35 = arith.constant 0 : index
    %c1_36 = arith.constant 1 : index
    %c0_37 = arith.constant 0 : index
    %c0_38 = arith.constant 0 : index
    %41 = vector.load %arg11[%c0_35, %c1_36, %c0_37, %c0_38] : memref<1x4x8x8xbf16, #tpu.memory_space<vmem>>, vector<1x1x8x8xbf16>
    %42 = vector.shape_cast %41 : vector<1x1x8x8xbf16> to vector<8x8xbf16>
    %43 = vector.shape_cast %40 : vector<8x8xbf16> to vector<1x1x8x8xbf16>
    tpu.vector_store %arg11[%c0_35, %c1_36, %c0_37, %c0_38], %43 {strides = array<i32>} : memref<1x4x8x8xbf16, #tpu.memory_space<vmem>>, vector<1x1x8x8xbf16>,
    %44 = vector.extract_strided_slice %7 {offsets = [0, 16], sizes = [8, 8], strides = [1, 1]} : vector<8x32xbf16> to vector<8x8xbf16>
    %c0_39 = arith.constant 0 : index
    %c2 = arith.constant 2 : index
    %c0_40 = arith.constant 0 : index
    %c0_41 = arith.constant 0 : index
    %45 = vector.load %arg9[%c0_39, %c2, %c0_40, %c0_41] : memref<1x4x8x8xbf16, #tpu.memory_space<vmem>>, vector<1x1x8x8xbf16>
    %46 = vector.shape_cast %45 : vector<1x1x8x8xbf16> to vector<8x8xbf16>
    %47 = vector.shape_cast %44 : vector<8x8xbf16> to vector<1x1x8x8xbf16>
    tpu.vector_store %arg9[%c0_39, %c2, %c0_40, %c0_41], %47 {strides = array<i32>} : memref<1x4x8x8xbf16, #tpu.memory_space<vmem>>, vector<1x1x8x8xbf16>,
    %48 = vector.extract_strided_slice %13 {offsets = [0, 16], sizes = [8, 8], strides = [1, 1]} : vector<8x32xbf16> to vector<8x8xbf16>
    %c0_42 = arith.constant 0 : index
    %c2_43 = arith.constant 2 : index
    %c0_44 = arith.constant 0 : index
    %c0_45 = arith.constant 0 : index
    %49 = vector.load %arg10[%c0_42, %c2_43, %c0_44, %c0_45] : memref<1x4x8x8xbf16, #tpu.memory_space<vmem>>, vector<1x1x8x8xbf16>
    %50 = vector.shape_cast %49 : vector<1x1x8x8xbf16> to vector<8x8xbf16>
    %51 = vector.shape_cast %48 : vector<8x8xbf16> to vector<1x1x8x8xbf16>
    tpu.vector_store %arg10[%c0_42, %c2_43, %c0_44, %c0_45], %51 {strides = array<i32>} : memref<1x4x8x8xbf16, #tpu.memory_space<vmem>>, vector<1x1x8x8xbf16>,
    %52 = vector.extract_strided_slice %19 {offsets = [0, 16], sizes = [8, 8], strides = [1, 1]} : vector<8x32xbf16> to vector<8x8xbf16>
    %c0_46 = arith.constant 0 : index
    %c2_47 = arith.constant 2 : index
    %c0_48 = arith.constant 0 : index
    %c0_49 = arith.constant 0 : index
    %53 = vector.load %arg11[%c0_46, %c2_47, %c0_48, %c0_49] : memref<1x4x8x8xbf16, #tpu.memory_space<vmem>>, vector<1x1x8x8xbf16>
    %54 = vector.shape_cast %53 : vector<1x1x8x8xbf16> to vector<8x8xbf16>
    %55 = vector.shape_cast %52 : vector<8x8xbf16> to vector<1x1x8x8xbf16>
    tpu.vector_store %arg11[%c0_46, %c2_47, %c0_48, %c0_49], %55 {strides = array<i32>} : memref<1x4x8x8xbf16, #tpu.memory_space<vmem>>, vector<1x1x8x8xbf16>,
    %56 = vector.extract_strided_slice %7 {offsets = [0, 24], sizes = [8, 8], strides = [1, 1]} : vector<8x32xbf16> to vector<8x8xbf16>
    %c0_50 = arith.constant 0 : index
    %c3 = arith.constant 3 : index
    %c0_51 = arith.constant 0 : index
    %c0_52 = arith.constant 0 : index
    %57 = vector.load %arg9[%c0_50, %c3, %c0_51, %c0_52] : memref<1x4x8x8xbf16, #tpu.memory_space<vmem>>, vector<1x1x8x8xbf16>
    %58 = vector.shape_cast %57 : vector<1x1x8x8xbf16> to vector<8x8xbf16>
    %59 = vector.shape_cast %56 : vector<8x8xbf16> to vector<1x1x8x8xbf16>
    tpu.vector_store %arg9[%c0_50, %c3, %c0_51, %c0_52], %59 {strides = array<i32>} : memref<1x4x8x8xbf16, #tpu.memory_space<vmem>>, vector<1x1x8x8xbf16>,
    %60 = vector.extract_strided_slice %13 {offsets = [0, 24], sizes = [8, 8], strides = [1, 1]} : vector<8x32xbf16> to vector<8x8xbf16>
    %c0_53 = arith.constant 0 : index
    %c3_54 = arith.constant 3 : index
    %c0_55 = arith.constant 0 : index
    %c0_56 = arith.constant 0 : index
    %61 = vector.load %arg10[%c0_53, %c3_54, %c0_55, %c0_56] : memref<1x4x8x8xbf16, #tpu.memory_space<vmem>>, vector<1x1x8x8xbf16>
    %62 = vector.shape_cast %61 : vector<1x1x8x8xbf16> to vector<8x8xbf16>
    %63 = vector.shape_cast %60 : vector<8x8xbf16> to vector<1x1x8x8xbf16>
    tpu.vector_store %arg10[%c0_53, %c3_54, %c0_55, %c0_56], %63 {strides = array<i32>} : memref<1x4x8x8xbf16, #tpu.memory_space<vmem>>, vector<1x1x8x8xbf16>,
    %64 = vector.extract_strided_slice %19 {offsets = [0, 24], sizes = [8, 8], strides = [1, 1]} : vector<8x32xbf16> to vector<8x8xbf16>
    %c0_57 = arith.constant 0 : index
    %c3_58 = arith.constant 3 : index
    %c0_59 = arith.constant 0 : index
    %c0_60 = arith.constant 0 : index
    %65 = vector.load %arg11[%c0_57, %c3_58, %c0_59, %c0_60] : memref<1x4x8x8xbf16, #tpu.memory_space<vmem>>, vector<1x1x8x8xbf16>
    %66 = vector.shape_cast %65 : vector<1x1x8x8xbf16> to vector<8x8xbf16>
    %67 = vector.shape_cast %64 : vector<8x8xbf16> to vector<1x1x8x8xbf16>
    tpu.vector_store %arg11[%c0_57, %c3_58, %c0_59, %c0_60], %67 {strides = array<i32>} : memref<1x4x8x8xbf16, #tpu.memory_space<vmem>>, vector<1x1x8x8xbf16>,
    return
  }
  func.func @transform_0(%arg0: i32, %arg1: i32) -> (i32, i32, i32) {
    %c0_i32 = arith.constant 0 : i32
    %c0_i32_0 = arith.constant 0 : i32
    return %arg0, %arg1, %c0_i32 : i32, i32, i32
  }
  func.func @transform_1(%arg0: i32, %arg1: i32) -> (i32, i32) {
    %c0_i32 = arith.constant 0 : i32
    %c0_i32_0 = arith.constant 0 : i32
    %c0_i32_1 = arith.constant 0 : i32
    return %c0_i32, %c0_i32_0 : i32, i32
  }
  func.func @transform_2(%arg0: i32, %arg1: i32) -> (i32, i32) {
    %c0_i32 = arith.constant 0 : i32
    %c0_i32_0 = arith.constant 0 : i32
    %c0_i32_1 = arith.constant 0 : i32
    return %c0_i32, %c0_i32_0 : i32, i32
  }
  func.func @transform_3(%arg0: i32, %arg1: i32) -> (i32, i32) {
    %c0_i32 = arith.constant 0 : i32
    %c0_i32_0 = arith.constant 0 : i32
    %c0_i32_1 = arith.constant 0 : i32
    return %c0_i32, %c0_i32_0 : i32, i32
  }
  func.func @transform_4(%arg0: i32, %arg1: i32) -> (i32, i32) {
    %c0_i32 = arith.constant 0 : i32
    %c0_i32_0 = arith.constant 0 : i32
    %c0_i32_1 = arith.constant 0 : i32
    return %c0_i32, %c0_i32_0 : i32, i32
  }
  func.func @transform_5(%arg0: i32, %arg1: i32) -> (i32, i32) {
    %c0_i32 = arith.constant 0 : i32
    %c0_i32_0 = arith.constant 0 : i32
    %c0_i32_1 = arith.constant 0 : i32
    return %c0_i32, %c0_i32_0 : i32, i32
  }
  func.func @transform_6(%arg0: i32, %arg1: i32) -> (i32, i32) {
    %c0_i32 = arith.constant 0 : i32
    %c0_i32_0 = arith.constant 0 : i32
    %c0_i32_1 = arith.constant 0 : i32
    return %c0_i32, %c0_i32_0 : i32, i32
  }
  func.func @transform_7(%arg0: i32, %arg1: i32) -> (i32, i32, i32, i32) {
    %c0_i32 = arith.constant 0 : i32
    %c0_i32_0 = arith.constant 0 : i32
    %c0_i32_1 = arith.constant 0 : i32
    return %arg0, %c0_i32, %arg1, %c0_i32_0 : i32, i32, i32, i32
  }
  func.func @transform_8(%arg0: i32, %arg1: i32) -> (i32, i32, i32, i32) {
    %c0_i32 = arith.constant 0 : i32
    %c0_i32_0 = arith.constant 0 : i32
    %c0_i32_1 = arith.constant 0 : i32
    return %arg0, %c0_i32, %arg1, %c0_i32_0 : i32, i32, i32, i32
  }
  func.func @transform_9(%arg0: i32, %arg1: i32) -> (i32, i32, i32, i32) {
    %c0_i32 = arith.constant 0 : i32
    %c0_i32_0 = arith.constant 0 : i32
    %c0_i32_1 = arith.constant 0 : i32
    return %arg0, %c0_i32, %arg1, %c0_i32_0 : i32, i32, i32, i32
  }
}

module attributes {stable_mosaic.version = 11 : i64} {
  func.func @qkv_kernel(%arg0: i32, %arg1: i32, %arg2: memref<1x8x32xbf16, #tpu.memory_space<vmem>>, %arg3: memref<32x32xbf16, #tpu.memory_space<vmem>>, %arg4: memref<1x32xf32, #tpu.memory_space<vmem>>, %arg5: memref<32x32xbf16, #tpu.memory_space<vmem>>, %arg6: memref<1x32xf32, #tpu.memory_space<vmem>>, %arg7: memref<32x32xbf16, #tpu.memory_space<vmem>>, %arg8: memref<1x32xf32, #tpu.memory_space<vmem>>, %arg9: memref<1x4x8x8xbf16, #tpu.memory_space<vmem>>, %arg10: memref<1x4x8x8xbf16, #tpu.memory_space<vmem>>, %arg11: memref<1x4x8x8xbf16, #tpu.memory_space<vmem>>) attributes {dimension_semantics = [#tpu.dimension_semantics<parallel>, #tpu.dimension_semantics<parallel>], iteration_bounds = array<i64: 2, 1>, scalar_prefetch = 0 : i64, scratch_operands = 0 : i64, tpu.core_type = #tpu.core_type<tc>, window_params = [{transform_indices = @transform_0, window_bounds = array<i64: 1, 8, 32>}, {pipeline_mode = #tpu.pipeline_mode<synchronous>, transform_indices = @transform_1, window_bounds = array<i64: 32, 32>}, {pipeline_mode = #tpu.pipeline_mode<synchronous>, transform_indices = @transform_2, window_bounds = array<i64: 1, 32>}, {pipeline_mode = #tpu.pipeline_mode<synchronous>, transform_indices = @transform_3, window_bounds = array<i64: 32, 32>}, {pipeline_mode = #tpu.pipeline_mode<synchronous>, transform_indices = @transform_4, window_bounds = array<i64: 1, 32>}, {pipeline_mode = #tpu.pipeline_mode<synchronous>, transform_indices = @transform_5, window_bounds = array<i64: 32, 32>}, {pipeline_mode = #tpu.pipeline_mode<synchronous>, transform_indices = @transform_6, window_bounds = array<i64: 1, 32>}, {transform_indices = @transform_7, window_bounds = array<i64: 1, 4, 8, 8>}, {transform_indices = @transform_8, window_bounds = array<i64: 1, 4, 8, 8>}, {transform_indices = @transform_9, window_bounds = array<i64: 1, 4, 8, 8>}]} {
    %c0 = arith.constant 0 : index
    %c0_0 = arith.constant 0 : index
    %c0_1 = arith.constant 0 : index
    %0 = vector.load %arg2[%c0, %c0_0, %c0_1] : memref<1x8x32xbf16, #tpu.memory_space<vmem>>, vector<1x8x32xbf16>
    %1 = vector.shape_cast %0 : vector<1x8x32xbf16> to vector<8x32xbf16>
    %c0_2 = arith.constant 0 : index
    %c0_3 = arith.constant 0 : index
    %2 = vector.load %arg3[%c0_2, %c0_3] : memref<32x32xbf16, #tpu.memory_space<vmem>>, vector<32x32xbf16>
    %cst = arith.constant dense<0.000000e+00> : vector<8x32xf32>
    %3 = tpu.matmul %1, %2, %cst {dimension_numbers = #tpu.dot_dimension_numbers<[1], [1], [0], [0], [0, 0, 1, 0], [], []>} : vector<8x32xbf16>, vector<32x32xbf16>, vector<8x32xf32> -> vector<8x32xf32>
    %c0_4 = arith.constant 0 : index
    %c0_5 = arith.constant 0 : index
    %4 = vector.load %arg4[%c0_4, %c0_5] : memref<1x32xf32, #tpu.memory_space<vmem>>, vector<1x32xf32>
    %5 = vector.broadcast %4 : vector<1x32xf32> to vector<8x32xf32>
    %6 = arith.addf %3, %5 : vector<8x32xf32>
    %7 = arith.truncf %6 : vector<8x32xf32> to vector<8x32xbf16>
    %c0_6 = arith.constant 0 : index
    %c0_7 = arith.constant 0 : index
    %8 = vector.load %arg5[%c0_6, %c0_7] : memref<32x32xbf16, #tpu.memory_space<vmem>>, vector<32x32xbf16>
    %cst_8 = arith.constant dense<0.000000e+00> : vector<8x32xf32>
    %9 = tpu.matmul %1, %8, %cst_8 {dimension_numbers = #tpu.dot_dimension_numbers<[1], [1], [0], [0], [0, 0, 1, 0], [], []>} : vector<8x32xbf16>, vector<32x32xbf16>, vector<8x32xf32> -> vector<8x32xf32>
    %c0_9 = arith.constant 0 : index
    %c0_10 = arith.constant 0 : index
    %10 = vector.load %arg6[%c0_9, %c0_10] : memref<1x32xf32, #tpu.memory_space<vmem>>, vector<1x32xf32>
    %11 = vector.broadcast %10 : vector<1x32xf32> to vector<8x32xf32>
    %12 = arith.addf %9, %11 : vector<8x32xf32>
    %13 = arith.truncf %12 : vector<8x32xf32> to vector<8x32xbf16>
    %c0_11 = arith.constant 0 : index
    %c0_12 = arith.constant 0 : index
    %14 = vector.load %arg7[%c0_11, %c0_12] : memref<32x32xbf16, #tpu.memory_space<vmem>>, vector<32x32xbf16>
    %cst_13 = arith.constant dense<0.000000e+00> : vector<8x32xf32>
    %15 = tpu.matmul %1, %14, %cst_13 {dimension_numbers = #tpu.dot_dimension_numbers<[1], [1], [0], [0], [0, 0, 1, 0], [], []>} : vector<8x32xbf16>, vector<32x32xbf16>, vector<8x32xf32> -> vector<8x32xf32>
    %c0_14 = arith.constant 0 : index
    %c0_15 = arith.constant 0 : index
    %16 = vector.load %arg8[%c0_14, %c0_15] : memref<1x32xf32, #tpu.memory_space<vmem>>, vector<1x32xf32>
    %17 = vector.broadcast %16 : vector<1x32xf32> to vector<8x32xf32>
    %18 = arith.addf %15, %17 : vector<8x32xf32>
    %19 = arith.truncf %18 : vector<8x32xf32> to vector<8x32xbf16>
    %20 = vector.extract_strided_slice %7 {offsets = [0, 0], sizes = [8, 8], strides = [1, 1]} : vector<8x32xbf16> to vector<8x8xbf16>
    %c0_16 = arith.constant 0 : index
    %c0_17 = arith.constant 0 : index
    %c0_18 = arith.constant 0 : index
    %c0_19 = arith.constant 0 : index
    %21 = vector.load %arg9[%c0_16, %c0_17, %c0_18, %c0_19] : memref<1x4x8x8xbf16, #tpu.memory_space<vmem>>, vector<1x1x8x8xbf16>
    %22 = vector.shape_cast %21 : vector<1x1x8x8xbf16> to vector<8x8xbf16>
    %23 = vector.shape_cast %20 : vector<8x8xbf16> to vector<1x1x8x8xbf16>
    tpu.vector_store %arg9[%c0_16, %c0_17, %c0_18, %c0_19], %23 {strides = array<i32>} : memref<1x4x8x8xbf16, #tpu.memory_space<vmem>>, vector<1x1x8x8xbf16>,
    %24 = vector.extract_strided_slice %13 {offsets = [0, 0], sizes = [8, 8], strides = [1, 1]} : vector<8x32xbf16> to vector<8x8xbf16>
    %c0_20 = arith.constant 0 : index
    %c0_21 = arith.constant 0 : index
    %c0_22 = arith.constant 0 : index
    %c0_23 = arith.constant 0 : index
    %25 = vector.load %arg10[%c0_20, %c0_21, %c0_22, %c0_23] : memref<1x4x8x8xbf16, #tpu.memory_space<vmem>>, vector<1x1x8x8xbf16>
    %26 = vector.shape_cast %25 : vector<1x1x8x8xbf16> to vector<8x8xbf16>
    %27 = vector.shape_cast %24 : vector<8x8xbf16> to vector<1x1x8x8xbf16>
    tpu.vector_store %arg10[%c0_20, %c0_21, %c0_22, %c0_23], %27 {strides = array<i32>} : memref<1x4x8x8xbf16, #tpu.memory_space<vmem>>, vector<1x1x8x8xbf16>,
    %28 = vector.extract_strided_slice %19 {offsets = [0, 0], sizes = [8, 8], strides = [1, 1]} : vector<8x32xbf16> to vector<8x8xbf16>
    %c0_24 = arith.constant 0 : index
    %c0_25 = arith.constant 0 : index
    %c0_26 = arith.constant 0 : index
    %c0_27 = arith.constant 0 : index
    %29 = vector.load %arg11[%c0_24, %c0_25, %c0_26, %c0_27] : memref<1x4x8x8xbf16, #tpu.memory_space<vmem>>, vector<1x1x8x8xbf16>
    %30 = vector.shape_cast %29 : vector<1x1x8x8xbf16> to vector<8x8xbf16>
    %31 = vector.shape_cast %28 : vector<8x8xbf16> to vector<1x1x8x8xbf16>
    tpu.vector_store %arg11[%c0_24, %c0_25, %c0_26, %c0_27], %31 {strides = array<i32>} : memref<1x4x8x8xbf16, #tpu.memory_space<vmem>>, vector<1x1x8x8xbf16>,
    %32 = vector.extract_strided_slice %7 {offsets = [0, 8], sizes = [8, 8], strides = [1, 1]} : vector<8x32xbf16> to vector<8x8xbf16>
    %c0_28 = arith.constant 0 : index
    %c1 = arith.constant 1 : index
    %c0_29 = arith.constant 0 : index
    %c0_30 = arith.constant 0 : index
    %33 = vector.load %arg9[%c0_28, %c1, %c0_29, %c0_30] : memref<1x4x8x8xbf16, #tpu.memory_space<vmem>>, vector<1x1x8x8xbf16>
    %34 = vector.shape_cast %33 : vector<1x1x8x8xbf16> to vector<8x8xbf16>
    %35 = vector.shape_cast %32 : vector<8x8xbf16> to vector<1x1x8x8xbf16>
    tpu.vector_store %arg9[%c0_28, %c1, %c0_29, %c0_30], %35 {strides = array<i32>} : memref<1x4x8x8xbf16, #tpu.memory_space<vmem>>, vector<1x1x8x8xbf16>,
    %36 = vector.extract_strided_slice %13 {offsets = [0, 8], sizes = [8, 8], strides = [1, 1]} : vector<8x32xbf16> to vector<8x8xbf16>
    %c0_31 = arith.constant 0 : index
    %c1_32 = arith.constant 1 : index
    %c0_33 = arith.constant 0 : index
    %c0_34 = arith.constant 0 : index
    %37 = vector.load %arg10[%c0_31, %c1_32, %c0_33, %c0_34] : memref<1x4x8x8xbf16, #tpu.memory_space<vmem>>, vector<1x1x8x8xbf16>
    %38 = vector.shape_cast %37 : vector<1x1x8x8xbf16> to vector<8x8xbf16>
    %39 = vector.shape_cast %36 : vector<8x8xbf16> to vector<1x1x8x8xbf16>
    tpu.vector_store %arg10[%c0_31, %c1_32, %c0_33, %c0_34], %39 {strides = array<i32>} : memref<1x4x8x8xbf16, #tpu.memory_space<vmem>>, vector<1x1x8x8xbf16>,
    %40 = vector.extract_strided_slice %19 {offsets = [0, 8], sizes = [8, 8], strides = [1, 1]} : vector<8x32xbf16> to vector<8x8xbf16>
    %c0_35 = arith.constant 0 : index
    %c1_36 = arith.constant 1 : index
    %c0_37 = arith.constant 0 : index
    %c0_38 = arith.constant 0 : index
    %41 = vector.load %arg11[%c0_35, %c1_36, %c0_37, %c0_38] : memref<1x4x8x8xbf16, #tpu.memory_space<vmem>>, vector<1x1x8x8xbf16>
    %42 = vector.shape_cast %41 : vector<1x1x8x8xbf16> to vector<8x8xbf16>
    %43 = vector.shape_cast %40 : vector<8x8xbf16> to vector<1x1x8x8xbf16>
    tpu.vector_store %arg11[%c0_35, %c1_36, %c0_37, %c0_38], %43 {strides = array<i32>} : memref<1x4x8x8xbf16, #tpu.memory_space<vmem>>, vector<1x1x8x8xbf16>,
    %44 = vector.extract_strided_slice %7 {offsets = [0, 16], sizes = [8, 8], strides = [1, 1]} : vector<8x32xbf16> to vector<8x8xbf16>
    %c0_39 = arith.constant 0 : index
    %c2 = arith.constant 2 : index
    %c0_40 = arith.constant 0 : index
    %c0_41 = arith.constant 0 : index
    %45 = vector.load %arg9[%c0_39, %c2, %c0_40, %c0_41] : memref<1x4x8x8xbf16, #tpu.memory_space<vmem>>, vector<1x1x8x8xbf16>
    %46 = vector.shape_cast %45 : vector<1x1x8x8xbf16> to vector<8x8xbf16>
    %47 = vector.shape_cast %44 : vector<8x8xbf16> to vector<1x1x8x8xbf16>
    tpu.vector_store %arg9[%c0_39, %c2, %c0_40, %c0_41], %47 {strides = array<i32>} : memref<1x4x8x8xbf16, #tpu.memory_space<vmem>>, vector<1x1x8x8xbf16>,
    %48 = vector.extract_strided_slice %13 {offsets = [0, 16], sizes = [8, 8], strides = [1, 1]} : vector<8x32xbf16> to vector<8x8xbf16>
    %c0_42 = arith.constant 0 : index
    %c2_43 = arith.constant 2 : index
    %c0_44 = arith.constant 0 : index
    %c0_45 = arith.constant 0 : index
    %49 = vector.load %arg10[%c0_42, %c2_43, %c0_44, %c0_45] : memref<1x4x8x8xbf16, #tpu.memory_space<vmem>>, vector<1x1x8x8xbf16>
    %50 = vector.shape_cast %49 : vector<1x1x8x8xbf16> to vector<8x8xbf16>
    %51 = vector.shape_cast %48 : vector<8x8xbf16> to vector<1x1x8x8xbf16>
    tpu.vector_store %arg10[%c0_42, %c2_43, %c0_44, %c0_45], %51 {strides = array<i32>} : memref<1x4x8x8xbf16, #tpu.memory_space<vmem>>, vector<1x1x8x8xbf16>,
    %52 = vector.extract_strided_slice %19 {offsets = [0, 16], sizes = [8, 8], strides = [1, 1]} : vector<8x32xbf16> to vector<8x8xbf16>
    %c0_46 = arith.constant 0 : index
    %c2_47 = arith.constant 2 : index
    %c0_48 = arith.constant 0 : index
    %c0_49 = arith.constant 0 : index
    %53 = vector.load %arg11[%c0_46, %c2_47, %c0_48, %c0_49] : memref<1x4x8x8xbf16, #tpu.memory_space<vmem>>, vector<1x1x8x8xbf16>
    %54 = vector.shape_cast %53 : vector<1x1x8x8xbf16> to vector<8x8xbf16>
    %55 = vector.shape_cast %52 : vector<8x8xbf16> to vector<1x1x8x8xbf16>
    tpu.vector_store %arg11[%c0_46, %c2_47, %c0_48, %c0_49], %55 {strides = array<i32>} : memref<1x4x8x8xbf16, #tpu.memory_space<vmem>>, vector<1x1x8x8xbf16>,
    %56 = vector.extract_strided_slice %7 {offsets = [0, 24], sizes = [8, 8], strides = [1, 1]} : vector<8x32xbf16> to vector<8x8xbf16>
    %c0_50 = arith.constant 0 : index
    %c3 = arith.constant 3 : index
    %c0_51 = arith.constant 0 : index
    %c0_52 = arith.constant 0 : index
    %57 = vector.load %arg9[%c0_50, %c3, %c0_51, %c0_52] : memref<1x4x8x8xbf16, #tpu.memory_space<vmem>>, vector<1x1x8x8xbf16>
    %58 = vector.shape_cast %57 : vector<1x1x8x8xbf16> to vector<8x8xbf16>
    %59 = vector.shape_cast %56 : vector<8x8xbf16> to vector<1x1x8x8xbf16>
    tpu.vector_store %arg9[%c0_50, %c3, %c0_51, %c0_52], %59 {strides = array<i32>} : memref<1x4x8x8xbf16, #tpu.memory_space<vmem>>, vector<1x1x8x8xbf16>,
    %60 = vector.extract_strided_slice %13 {offsets = [0, 24], sizes = [8, 8], strides = [1, 1]} : vector<8x32xbf16> to vector<8x8xbf16>
    %c0_53 = arith.constant 0 : index
    %c3_54 = arith.constant 3 : index
    %c0_55 = arith.constant 0 : index
    %c0_56 = arith.constant 0 : index
    %61 = vector.load %arg10[%c0_53, %c3_54, %c0_55, %c0_56] : memref<1x4x8x8xbf16, #tpu.memory_space<vmem>>, vector<1x1x8x8xbf16>
    %62 = vector.shape_cast %61 : vector<1x1x8x8xbf16> to vector<8x8xbf16>
    %63 = vector.shape_cast %60 : vector<8x8xbf16> to vector<1x1x8x8xbf16>
    tpu.vector_store %arg10[%c0_53, %c3_54, %c0_55, %c0_56], %63 {strides = array<i32>} : memref<1x4x8x8xbf16, #tpu.memory_space<vmem>>, vector<1x1x8x8xbf16>,
    %64 = vector.extract_strided_slice %19 {offsets = [0, 24], sizes = [8, 8], strides = [1, 1]} : vector<8x32xbf16> to vector<8x8xbf16>
    %c0_57 = arith.constant 0 : index
    %c3_58 = arith.constant 3 : index
    %c0_59 = arith.constant 0 : index
    %c0_60 = arith.constant 0 : index
    %65 = vector.load %arg11[%c0_57, %c3_58, %c0_59, %c0_60] : memref<1x4x8x8xbf16, #tpu.memory_space<vmem>>, vector<1x1x8x8xbf16>
    %66 = vector.shape_cast %65 : vector<1x1x8x8xbf16> to vector<8x8xbf16>
    %67 = vector.shape_cast %64 : vector<8x8xbf16> to vector<1x1x8x8xbf16>
    tpu.vector_store %arg11[%c0_57, %c3_58, %c0_59, %c0_60], %67 {strides = array<i32>} : memref<1x4x8x8xbf16, #tpu.memory_space<vmem>>, vector<1x1x8x8xbf16>,
    return
  }
  func.func @transform_0(%arg0: i32, %arg1: i32) -> (i32, i32, i32) {
    %c0_i32 = arith.constant 0 : i32
    %c0_i32_0 = arith.constant 0 : i32
    return %arg0, %arg1, %c0_i32 : i32, i32, i32
  }
  func.func @transform_1(%arg0: i32, %arg1: i32) -> (i32, i32) {
    %c0_i32 = arith.constant 0 : i32
    %c0_i32_0 = arith.constant 0 : i32
    %c0_i32_1 = arith.constant 0 : i32
    return %c0_i32, %c0_i32_0 : i32, i32
  }
  func.func @transform_2(%arg0: i32, %arg1: i32) -> (i32, i32) {
    %c0_i32 = arith.constant 0 : i32
    %c0_i32_0 = arith.constant 0 : i32
    %c0_i32_1 = arith.constant 0 : i32
    return %c0_i32, %c0_i32_0 : i32, i32
  }
  func.func @transform_3(%arg0: i32, %arg1: i32) -> (i32, i32) {
    %c0_i32 = arith.constant 0 : i32
    %c0_i32_0 = arith.constant 0 : i32
    %c0_i32_1 = arith.constant 0 : i32
    return %c0_i32, %c0_i32_0 : i32, i32
  }
  func.func @transform_4(%arg0: i32, %arg1: i32) -> (i32, i32) {
    %c0_i32 = arith.constant 0 : i32
    %c0_i32_0 = arith.constant 0 : i32
    %c0_i32_1 = arith.constant 0 : i32
    return %c0_i32, %c0_i32_0 : i32, i32
  }
  func.func @transform_5(%arg0: i32, %arg1: i32) -> (i32, i32) {
    %c0_i32 = arith.constant 0 : i32
    %c0_i32_0 = arith.constant 0 : i32
    %c0_i32_1 = arith.constant 0 : i32
    return %c0_i32, %c0_i32_0 : i32, i32
  }
  func.func @transform_6(%arg0: i32, %arg1: i32) -> (i32, i32) {
    %c0_i32 = arith.constant 0 : i32
    %c0_i32_0 = arith.constant 0 : i32
    %c0_i32_1 = arith.constant 0 : i32
    return %c0_i32, %c0_i32_0 : i32, i32
  }
  func.func @transform_7(%arg0: i32, %arg1: i32) -> (i32, i32, i32, i32) {
    %c0_i32 = arith.constant 0 : i32
    %c0_i32_0 = arith.constant 0 : i32
    %c0_i32_1 = arith.constant 0 : i32
    return %arg0, %c0_i32, %arg1, %c0_i32_0 : i32, i32, i32, i32
  }
  func.func @transform_8(%arg0: i32, %arg1: i32) -> (i32, i32, i32, i32) {
    %c0_i32 = arith.constant 0 : i32
    %c0_i32_0 = arith.constant 0 : i32
    %c0_i32_1 = arith.constant 0 : i32
    return %arg0, %c0_i32, %arg1, %c0_i32_0 : i32, i32, i32, i32
  }
  func.func @transform_9(%arg0: i32, %arg1: i32) -> (i32, i32, i32, i32) {
    %c0_i32 = arith.constant 0 : i32
    %c0_i32_0 = arith.constant 0 : i32
    %c0_i32_1 = arith.constant 0 : i32
    return %arg0, %c0_i32, %arg1, %c0_i32_0 : i32, i32, i32, i32
  }
}

</mosaic_0001>

<bundles_post_ra>
// kernel: tpu_custom_call.1
= control target key start
LH: loop header
LB: loop body
LE: loop exit
PB: predicated region body
PF: predicated region fallthrough
CT: control target
= control target key end

     0   :  { %s1800_s0 = inlined_call_operand.hbm [shape: bf16[2,8,32], index: 0, kind: input, shape index: {}]   ;;  %s1801_s1 = inlined_call_operand.hbm [shape: bf16[32,32], index: 1, kind: input, shape index: {}]   ;;  %s1802_s2 = inlined_call_operand.vmem [shape: f32[1,32], index: 2, kind: input, shape index: {}]   ;;  %s1803_s3 = inlined_call_operand.hbm [shape: bf16[32,32], index: 3, kind: input, shape index: {}]   ;;  %s1804_s4 = inlined_call_operand.vmem [shape: f32[1,32], index: 4, kind: input, shape index: {}]   ;;  %s1805_s5 = inlined_call_operand.vmem [shape: bf16[32,32], index: 5, kind: input, shape index: {}]   ;;  %s1806_s6 = inlined_call_operand.vmem [shape: f32[1,32], index: 6, kind: input, shape index: {}]   ;;  %s1807_s7 = inlined_call_operand.hbm [shape: bf16[2,4,8,8], index: 7, kind: output, shape index: {0}]   ;;  %s1808_s8 = inlined_call_operand.hbm [shape: bf16[2,4,8,8], index: 8, kind: output, shape index: {1}]   ;;  %s1809_s9 = inlined_call_operand.hbm [shape: bf16[2,4,8,8], index: 9, kind: output, shape index: {2}]  }
   0x1   :  { %1819 = sst [smem:[#allocation18_spill]] %s1809_s9 }
   0x2   :  { %15 = vsyncpa [#allocation3], 0 }
   0x3   :  { %17 = vsyncpa [#allocation3 + $0x1], 0 }
   0x4   :  { %18 = vsyncpa [#allocation6], 0 }
   0x5   :  { %19 = vsyncpa [#allocation4], 0 }
   0x6   :  { %21 = vsyncpa [#allocation4 + $0x1], 0 }
   0x7   :  { %22 = vsyncpa [#allocation10], 0 }
   0x8   :  { %24 = vsyncpa [#allocation10 + $0x1], 0  ;;  %s1407_s30 = smov 0   ;;  %s1409_s10 = smov 0  }
   0x9   :  { %s1411_s11 = smov 0   ;;  %s1413_s12 = smov 0  }
   0xa   :  { %s1415_s13 = smov 0   ;;  %s1417_s14 = smov 0  }
   0xb LB: > { %1820 = sst [smem:[#allocation16_spill]] %s1320_s30  ;;  %s1438_s15 = sadd.s32 4294967295, %s1340_s14   ;;  %s1340_s14 = sphi %s1417_s14, %s30_s14   ;;  %s1336_s13 = sphi %s1415_s13, %s1845_s13   ;;  %s1332_s12 = sphi %s1413_s12, %s1844_s12   ;;  %s1328_s11 = sphi %s1411_s11, %s1843_s11   ;;  %s1324_s10 = sphi %s1409_s10, %s1842_s10   ;;  %s1320_s30 = sphi %s1407_s30, %s1841_s30  }
   0xc   : > { %s1810_s16 = sadd.s32 4294967294, %s1340_s14   ;;  %p64_p0 = scmp.ne.s32.totalorder %s1324_s10, %s1320_s30 }
   0xd   : > { %p1811_p1 = scmp.eq.s32.totalorder %s1438_s15, 0  ;;  %p222_p3 = scmp.eq.s32.totalorder %s1810_s16, 1 }
   0xe   : > { %p913_p5 = scmp.ge.s32.totalorder %s1340_s14, 1  ;;  %p285_p7 = scmp.lt.s32.totalorder %s1340_s14, 3 }
   0xf   : > { %p1449_p4 = por %p1811_p1, %p64_p0  ;;  %p1454_p6 = por %p222_p3, %p64_p0 }
  0x10   : > { %p1459_p8 = pnand %p913_p5, %p285_p7  ;;  %s1342_s20 = smov [#allocation5]  }
  0x11   : > { %s1821_s17 = scalar_select %p1449_p4, 1, 0 }
  0x12   : > { %s1822_s18 = scalar_select %p1454_p6, 1, 0 }
  0x13   : > { %s297_s21 = sshll.u32 %s1342_s20, 4  ;;  %p1016_p9 = pneg %p1459_p8  ;;  %s1463_s21 = int_to_ptr.vmem [resolvable:$true] %s297_s21 }
  0x14   : > { %1823 = sst [smem:[#allocation17_spill]] %s1822_s18  ;;  %s1343_s23 = smov [#allocation7]  }
  0x15   : > { %p1470_p11 = pnand %p1016_p9, %p1811_p1  ;;  %s313_s24 = sshll.u32 %s1343_s23, 4  ;;  %s1474_s24 = int_to_ptr.vmem [resolvable:$true] %s313_s24 }
  0x16   : > { %s1108_s27 = scalar_lea.hbm %s1801_s1, 256 }
  0x17   : > { %p1109_p12 = scmp.ne.s32.totalorder %s1801_s1, %s1108_s27  ;;  %p1110_p13 = pneg %p1470_p11 }
  0x18   : > { %p1115_p5 = scmp.lt.u32.totalorder %s1108_s27, %s1801_s1 }
  0x19   : > { %p1111_p0 = pnand %p1110_p13, %p1109_p12 }
  0x1b   : > { %p1112_p3 = pneg %p1111_p0 }
  0x1d   : > { %p1117_p7 = pnand %p1115_p5, %p1112_p3 }
  0x1f   : > { %1120 = shalt.err (!%p1117_p7)
}
  0x20   : > { %s1121_s23 = scalar_lea.vmem %s1463_s21, 256  ;;  %p1129_p2 = scmp.lt.s32.totalorder %s1463_s21, %s1463_s21 }
  0x21   : > { %p1122_p9 = scmp.ne.s32.totalorder %s1463_s21, %s1121_s23  ;;  %p1130_p12 = scmp.lt.s32.totalorder %s1121_s23, %s1121_s23 }
  0x23   : > { %p1124_p10 = pnand %p1122_p9, %p1110_p13  ;;  %p1131_p0 = por %p1130_p12, %p1129_p2 }
  0x25   : > { %p1125_p1 = pneg %p1124_p10 }
  0x27   : > { %p1132_p6 = pnand %p1131_p0, %p1125_p1 }
  0x29   : > { %1135 = shalt.err (!%p1132_p6)
}
  0x2a   : > { %s1344_s16 = smov 64   ;;  %s1345_s25 = smov 4  }
  0x2b   : > { %1019 = dma.hbm_to_vmem [thread:$0]  (!%p1470_p11), %s1801_s1, 256, %s1463_s21, [#allocation6], %s1344_s16, %s1344_s16, %s1345_s25  }
  0x2c   : > { %s1136_s20 = scalar_lea.hbm %s1803_s3, 256 }
  0x2d   : > { %p1137_p2 = scmp.ne.s32.totalorder %s1803_s3, %s1136_s20  ;;  %p1143_p10 = scmp.lt.u32.totalorder %s1136_s20, %s1803_s3 }
  0x2f   : > { %p1139_p1 = pnand %p1137_p2, %p1110_p13 }
  0x31   : > { %p1140_p6 = pneg %p1139_p1 }
  0x33   : > { %p1145_p3 = pnand %p1143_p10, %p1140_p6 }
  0x35   : > { %1148 = shalt.err (!%p1145_p3)
}
  0x36   : > { %s1149_s21 = scalar_lea.vmem %s1474_s24, 256  ;;  %p1157_p12 = scmp.lt.s32.totalorder %s1474_s24, %s1474_s24 }
  0x37   : > { %p1150_p5 = scmp.ne.s32.totalorder %s1474_s24, %s1149_s21  ;;  %p1158_p0 = scmp.lt.s32.totalorder %s1149_s21, %s1149_s21 }
  0x39   : > { %p1152_p7 = pnand %p1150_p5, %p1110_p13  ;;  %p1159_p2 = por %p1158_p0, %p1157_p12 }
  0x3b   : > { %p1153_p9 = pneg %p1152_p7 }
  0x3d   : > { %p1160_p1 = pnand %p1159_p2, %p1153_p9 }
  0x3f   : > { %1163 = shalt.err (!%p1160_p1)
}
  0x40   : > { %1022 = dma.hbm_to_vmem [thread:$0]  (!%p1470_p11), %s1803_s3, 256, %s1474_s24, [#allocation6], %s1344_s16, %s1344_s16, %s1345_s25  }
  0x41   : > { %s42_s18 = sadd.s32 1, %s1336_s13  ;;  %s51_s26 = sadd.s32 1, %s1328_s11 }
  0x42   : > { %p44_p13 = scmp.ge.s32.totalorder %s42_s18, 2  ;;  %p58_p6 = scmp.ne.s32.totalorder %s1328_s11, %s1324_s10 }
  0x43   : > { %p59_p10 = scmp.eq.s32.totalorder %s1340_s14, 0  ;;  %p1039_p3 = scmp.lt.s32.totalorder %s1340_s14, 2 }
  0x44   : > { %s1847_s18 = smov (%p44_p13, %s42_s18), 0  ;;  %p1826_p7 = scmp.eq.s32.totalorder %s1438_s15, 1 }
  0x45   : > { %p60_p5 = por %p59_p10, %p58_p6  ;;  %s46_s27 = ssub.s32 %s1336_s13, %s1847_s18 }
  0x46   : > { %p1538_p9 = por %p1826_p7, %p58_p6  ;;  %s336_s28 = sand.u32 1, %s1328_s11  }
  0x47   : > { %p49_p12 = scmp.eq.s32.totalorder %s46_s27, 0  ;;  %s917_s24 = sshll.u32 %s336_s28, 2 }
  0x48   : > { %s1827_s22 = scalar_select %p1538_p9, 1, 0 }
  0x49   : > { %s918_s16 = sshll.u32 %s1336_s13, 6  ;;  %s340_s21 = scalar_lea.vmem [#allocation2], %s917_s24 }
  0x4a   : > { %s1547_s25 = scalar_select %p49_p12, %s1328_s11, %s51_s26  }
  0x4b   : > { %s1552_s23 = scalar_lea.hbm %s1800_s0, %s918_s16  ;;  %s348_s9 = sshll.u32 %s340_s21, 4  ;;  %s1560_s9 = int_to_ptr.vmem [resolvable:$true] %s348_s9 }
  0x4c   : > { %p1556_p11 = pnand %p1039_p3, %p60_p5  ;;  %s337_s26 = scalar_lea.sflag [#allocation3], %s336_s28 }
  0x4d   : > { %s1164_s27 = scalar_lea.hbm %s1552_s23, 64  ;;  %s1169_s29 = scalar_lea.hbm %s1800_s0, 128 }
  0x4e   : > { %p1165_p0 = scmp.ne.s32.totalorder %s1552_s23, %s1164_s27  ;;  %p1166_p2 = pneg %p1556_p11 }
  0x4f   : > { %p1170_p6 = scmp.lt.u32.totalorder %s1552_s23, %s1800_s0  ;;  %p1171_p10 = scmp.lt.u32.totalorder %s1169_s29, %s1164_s27 }
  0x50   : > { %p1167_p1 = pnand %p1166_p2, %p1165_p0  ;;  %p1173_p5 = scmp.lt.u32.totalorder %s1164_s27, %s1552_s23 }
  0x51   : > { %p1172_p3 = por %p1171_p10, %p1170_p6 }
  0x52   : > { %p1168_p13 = pneg %p1167_p1 }
  0x53   : > { %p1174_p7 = por %p1173_p5, %p1172_p3 }
  0x55   : > { %p1175_p12 = pnand %p1174_p7, %p1168_p13 }
  0x57   : > { %1178 = shalt.err (!%p1175_p12)
}
  0x58   : > { %s1179_s28 = scalar_lea.vmem %s1560_s9, 64  ;;  %s1346_s24 = smov [#allocation2]  }
  0x59   : > { %p1180_p0 = scmp.ne.s32.totalorder %s1560_s9, %s1179_s28  ;;  %s1184_s16 = sshll.u32 %s1346_s24, 4  ;;  %s1185_s16 = int_to_ptr.vmem [resolvable:$false] %s1184_s16 }
  0x5a   : > { %s1186_s20 = scalar_lea.vmem %s1185_s16, 128  ;;  %p1187_p4 = scmp.lt.s32.totalorder %s1560_s9, %s1185_s16 }
  0x5b   : > { %p1182_p1 = pnand %p1180_p0, %p1166_p2  ;;  %p1188_p6 = scmp.lt.s32.totalorder %s1186_s20, %s1179_s28 }
  0x5d   : > { %p1183_p9 = pneg %p1182_p1  ;;  %p1189_p10 = por %p1188_p6, %p1187_p4 }
  0x5f   : > { %p1190_p3 = pnand %p1189_p10, %p1183_p9 }
  0x61   : > { %1193 = shalt.err (!%p1190_p3)
}
  0x62   : > { %1026 = dma.hbm_to_vmem [thread:$0]  (!%p1556_p11), %s1552_s23, 64, %s1560_s9, %s337_s26  }
  0x63   : > { %357 = sbr.rel (%p1459_p8) target bundleno = 526 (0x20e), region = 48  ;;  %s1590_s27 = sand.u32 (!%p1459_p8), 1, %s1324_s10  }
  0x64   : > { %s920_s29 = sshll.u32 (!%p1459_p8), %s1590_s27, 2  ;;  %s360_s21 = scalar_lea.sflag (!%p1459_p8), [#allocation3], %s1590_s27 }
  0x65   : > { %s363_s28 = scalar_lea.vmem (!%p1459_p8), [#allocation2], %s920_s29  ;;  %p1829_p4 = scmp.ne.s32.totalorder (!%p1459_p8), %s1821_s17, 0 }
  0x6a   : > { %1303 = dma.done.wait (%p1829_p4), %s360_s21, 64  }
  0x6b   : > { %1305 = vsyncadd (%p1829_p4), %s360_s21, 4294967232  ;;  %p1830_p9 = scmp.eq.s32.totalorder %s1438_s15, 0 }
  0x6d   : > { %1307 = dma.done.wait (%p1830_p9), [#allocation6], 512   ;;  %p1831_p11 = pmov %p1830_p9 }
  0x6e   : > { %v1347_v0 = vmov 0.0   ;;  %vm1348_vm0 = vmmov 0   ;;  %vm439_vm1 = vcmask 261120   ;;  %v1102_v1 = vld [vmem:[#allocation5] sm:$0xff]   ;;  %v1103_v2 = vld [vmem:[#allocation7] sm:$0xff]   ;;  %v1104_v5 = vld [vmem:[#allocation5 + $0x8] sm:$0xff]  }
  0x6f   : > { %1309 = vsyncadd (%p1831_p11), [#allocation6], 4294966784  ;;  %976 = vmatprep.subr.bf16.mxu0 %v1347_v0  ;;  %984 = vmatprep.subr.bf16.mxu1 %v1347_v0  ;;  %v444_v3 = vsel %vm439_vm1, %v1102_v1, 0  ;;  %v512_v4 = vsel %vm439_vm1, %v1103_v2, 0  ;;  %v1105_v6 = vld [vmem:[#allocation7 + $0x8] sm:$0xff]   ;;  %v447_v7 = vsel %vm439_vm1, %v1104_v5, 0 }
  0x70   : > { %980 = vmatprep.mubr.msk.bf16.mxu0 %vm1348_vm0, %v1347_v0  ;;  %988 = vmatprep.mubr.msk.bf16.mxu1 %vm1348_vm0, %v1347_v0  ;;  %v515_v8 = vsel %vm439_vm1, %v1105_v6, 0  ;;  %v1106_v9 = vld [vmem:[%s1805_s5] sm:$0xff]   ;;  %v417_v10 = vld [vmem:[%s363_s28] sm:$0xf]  ;;  %v1107_v12 = vld [vmem:[%s1805_s5 + $0x8] sm:$0xff]   ;;  %s1624_s24 = sshll.u32 %s1590_s27, 4 }
  0x71   : > { %977 = vmatpush3.bf16.xpose.msra.mxu0 %v444_v3  ;;  %985 = vmatpush3.bf16.xpose.msra.mxu1 %v512_v4  ;;  %v580_v11 = vsel %vm439_vm1, %v1106_v9, 0  ;;  %v583_v13 = vsel %vm439_vm1, %v1107_v12, 0  ;;  %v926_v14 = vld [vmem:[%s1802_s2] ss:$0 sm:$0xff]  ;;  %vm626_vm2 = vcmask 60416   ;;  %s1630_s29 = scalar_lea.vmem [#allocation8], %s1624_s24 }
  0x72   : > { %978 = vmatprep.subr.bf16.mxu0 %v1347_v0  ;;  %986 = vmatprep.subr.bf16.mxu1 %v1347_v0  ;;  %v930_v15 = vld [vmem:[%s1804_s4] ss:$0 sm:$0xff]  ;;  %s1635_s21 = scalar_lea.vmem [#allocation9], %s1624_s24  ;;  %s1349_s28 = smov 104  }
  0x73   : > { %s1350_s17 = smov 120   ;;  %s1351_s19 = smov 112   ;;  %v934_v28 = vld [vmem:[%s1806_s6] ss:$0 sm:$0xff] }
  0x74   : > { %s1643_s30 = scalar_lea.vmem [#allocation11], %s1624_s24  ;;  %s726_s26 = sshll.u32 %s1635_s21, 4  ;;  %s1652_s26 = int_to_ptr.vmem [resolvable:$true] %s726_s26 }
  0x75   : > { %s689_s16 = sand.u32 1, %s1438_s15   ;;  %s1650_s20 = sshll.u32 %s1332_s12, 8 }
  0x76   : > { %s1668_s12 = scalar_lea.sflag [#allocation10], %s689_s16  ;;  %s1194_s15 = scalar_lea.vmem %s1652_s26, 256 }
  0x77   : > { %p1195_p8 = scmp.ne.s32.totalorder %s1652_s26, %s1194_s15  ;;  %p1832_p2 = scmp.ne.s32.totalorder %s1827_s22, 0 }
  0x79   : > { %979 = vmatpush3.bf16.xpose.msra.mxu0 %v447_v7  ;;  %987 = vmatpush3.bf16.xpose.msra.mxu1 %v515_v8  ;;  %p1196_p13 = pnand %p1195_p8, %p1832_p2 }
  0x7a   : > { %992 = vmatprep.subr.bf16.mxu0 %v1347_v0 }
  0x7b   : > { %p1197_p5 = pneg %p1196_p13 }
  0x80   : > { %981 = vmatmul.mubr.msk.bf16.vlgmr.msra.gmra.mrb[0].mxu0 %vm439_vm1, %v417_v10  ;;  %989 = vmatmul.mubr.msk.bf16.vlgmr.msra.gmra.mrb[0].mxu1 %vm439_vm1, %v417_v10 }
  0x81   : > { %993 = vmatpush3.bf16.xpose.msra.mxu0 %v580_v11  ;;  %996 = vmatprep.mubr.msk.bf16.mxu0 %vm1348_vm0, %v1347_v0 }
  0x82   : > { %994 = vmatprep.subr.bf16.mxu0 %v1347_v0 }
  0x89   : > { %995 = vmatpush3.bf16.xpose.msra.mxu0 %v583_v13 }
  0x90   : > { %997 = vmatmul.mubr.msk.bf16.vlgmr.msra.gmra.mrb[4].mxu0 %vm439_vm1, %v417_v10 }
 0x153   : > { %v483_v16 = vpop.f32.mrb[0].mxu0  ;;  %v551_v18 = vpop.f32.mrb[0].mxu1 }
 0x154   : > { %v484_v17 = vadd.f32 %v926_v14, %v483_v16  ;;  %v982_v19 = vpop.f32.mrb[1].mxu0  ;;  %v552_v20 = vadd.f32 %v930_v15, %v551_v18  ;;  %v990_v22 = vpop.f32.mrb[1].mxu1 }
 0x155   : > { %v486_v21 = vpop.f32.mrb[2].mxu0  ;;  %v554_v25 = vpop.f32.mrb[2].mxu1 }
 0x156   : > { %v489_v23 = vpack.c.bf16 %v484_v17, %v484_v17  ;;  %v983_v24 = vpop.f32.mrb[3].mxu0  ;;  %v557_v26 = vpack.c.bf16 %v552_v20, %v552_v20  ;;  %v991_v27 = vpop.f32.mrb[3].mxu1 }
 0x158   : > { %627 = vst.msk [vmem:[%s1630_s29] sm:$0xf] %vm626_vm2, %v489_v23  ;;  %628 = vst.msk [vmem:[%s1635_s21] sm:$0xf] %vm626_vm2, %v557_v26  ;;  %674 = vrot.lane.b32.xlu1 %v557_v26, %s1349_s28  ;;  %641 = vrot.lane.b32.xlu0 %v557_v26, %s1350_s17 }
 0x15c   : > { %633 = vrot.lane.b32.xlu1 %v489_v23, %s1350_s17  ;;  %659 = vrot.lane.b32.xlu0 %v557_v26, %s1351_s19 }
 0x160   : > { %654 = vrot.lane.b32.xlu1 %v489_v23, %s1351_s19 }
 0x163   : > { %v619_v29 = vpop.f32.mrb[4].mxu0 }
 0x164   : > { %v620_v30 = vadd.f32 %v934_v28, %v619_v29  ;;  %v998_v31 = vpop.f32.mrb[5].mxu0  ;;  %669 = vrot.lane.b32.xlu1 %v489_v23, %s1349_s28 }
 0x165   : > { %v622_v32 = vpop.f32.mrb[6].mxu0 }
 0x166   : > { %v625_v33 = vpack.c.bf16 %v620_v30, %v620_v30  ;;  %v999_v34 = vpop.f32.mrb[7].mxu0 }
 0x168   : > { %629 = vst.msk [vmem:[%s1643_s30] sm:$0xf] %vm626_vm2, %v625_v33  ;;  %649 = vrot.lane.b32.xlu0 %v625_v33, %s1350_s17 }
 0x16c   : > { %664 = vrot.lane.b32.xlu0 %v625_v33, %s1351_s19  ;;  %s1352_s19 = smov [#allocation9]  }
 0x16d   : > { %s1198_s23 = sshll.u32 %s1352_s19, 4  ;;  %s1199_s23 = int_to_ptr.vmem [resolvable:$false] %s1198_s23 }
 0x16e   : > { %s1200_s9 = scalar_lea.vmem %s1199_s23, 512  ;;  %p1201_p7 = scmp.lt.s32.totalorder %s1652_s26, %s1199_s23 }
 0x16f   : > { %p1202_p12 = scmp.lt.s32.totalorder %s1200_s9, %s1194_s15 }
 0x170   : > { %679 = vrot.lane.b32.xlu0 %v625_v33, %s1349_s28  ;;  %s1662_s28 = scalar_lea.hbm %s1808_s8, %s1650_s20 }
 0x171   : > { %p1203_p0 = por %p1202_p12, %p1201_p7 }
 0x173   : > { %p1204_p1 = pnand %p1203_p0, %p1197_p5 }
 0x1ca   : > { %v675_v35 = vpop.permute.xlu1 %674  ;;  %v642_v36 = vpop.permute.xlu0 %641 }
 0x1cb   : > { %948 = vst.msk [vmem:[%s1635_s21 + $0xc] sm:$0xf] %vm626_vm2, %v675_v35  ;;  %941 = vst.msk [vmem:[%s1635_s21 + $0x4] sm:$0xf] %vm626_vm2, %v642_v36 }
 0x1ce   : > { %v634_v37 = vpop.permute.xlu1 %633  ;;  %v660_v38 = vpop.permute.xlu0 %659 }
 0x1cf   : > { %939 = vst.msk [vmem:[%s1630_s29 + $0x4] sm:$0xf] %vm626_vm2, %v634_v37  ;;  %945 = vst.msk [vmem:[%s1635_s21 + $0x8] sm:$0xf] %vm626_vm2, %v660_v38 }
 0x1d0   : > { %1207 = shalt.err (!%p1204_p1)
}
 0x1d1   : > { %s1208_s21 = scalar_lea.hbm %s1662_s28, 256  ;;  %s1212_s17 = scalar_lea.hbm %s1808_s8, 512 }
 0x1d2   : > { %p1209_p6 = scmp.ne.s32.totalorder %s1662_s28, %s1208_s21  ;;  %p1213_p4 = scmp.lt.u32.totalorder %s1662_s28, %s1808_s8 }
 0x1d3   : > { %p1214_p9 = scmp.lt.u32.totalorder %s1212_s17, %s1208_s21  ;;  %p1216_p8 = scmp.lt.u32.totalorder %s1208_s21, %s1662_s28 }
 0x1d4   : > { %p1210_p10 = pnand %p1209_p6, %p1832_p2 }
 0x1d5   : > { %p1215_p11 = por %p1214_p9, %p1213_p4 }
 0x1d6   : > { %p1211_p3 = pneg %p1210_p10 }
 0x1d7   : > { %p1217_p13 = por %p1216_p8, %p1215_p11 }
 0x1d9   : > { %p1218_p5 = pnand %p1217_p13, %p1211_p3 }
 0x1db   : > { %1221 = shalt.err (!%p1218_p5)
}
 0x1dc   : > { %s1817_s15 = smov 64   ;;  %s1354_s9 = smov 4   ;;  %v655_v39 = vpop.permute.xlu1 %654 }
 0x1dd   : > { %1011 = dma.vmem_to_hbm [thread:$0]  (%p1832_p2), %s1652_s26, 256, %s1662_s28, %s1668_s12, %s1817_s15, %s1817_s15, %s1354_s9  }
 0x1de   : > { %s709_s21 = sshll.u32 %s1630_s29, 4  ;;  %944 = vst.msk [vmem:[%s1630_s29 + $0x8] sm:$0xf] %vm626_vm2, %v655_v39  ;;  %s1704_s17 = scalar_lea.hbm %s1807_s7, %s1650_s20  ;;  %s1698_s21 = int_to_ptr.vmem [resolvable:$true] %s709_s21 }
 0x1df   : > { %s1222_s23 = scalar_lea.vmem %s1698_s21, 256  ;;  %s1355_s26 = smov [#allocation8]  }
 0x1e0   : > { %v670_v40 = vpop.permute.xlu1 %669  ;;  %p1223_p7 = scmp.ne.s32.totalorder %s1698_s21, %s1222_s23  ;;  %s1226_s28 = sshll.u32 %s1355_s26, 4  ;;  %s1227_s28 = int_to_ptr.vmem [resolvable:$false] %s1226_s28 }
 0x1e1   : > { %947 = vst.msk [vmem:[%s1630_s29 + $0xc] sm:$0xf] %vm626_vm2, %v670_v40  ;;  %s1228_s15 = scalar_lea.vmem %s1227_s28, 512  ;;  %p1229_p1 = scmp.lt.s32.totalorder %s1698_s21, %s1227_s28 }
 0x1e2   : > { %p1224_p12 = pnand %p1223_p7, %p1832_p2  ;;  %p1230_p6 = scmp.lt.s32.totalorder %s1228_s15, %s1222_s23 }
 0x1e4   : > { %p1225_p0 = pneg %p1224_p12  ;;  %p1231_p10 = por %p1230_p6, %p1229_p1 }
 0x1e6   : > { %p1232_p3 = pnand %p1231_p10, %p1225_p0 }
 0x1e8   : > { %1235 = shalt.err (!%p1232_p3)
}
 0x1e9   : > { %s1236_s29 = scalar_lea.hbm %s1704_s17, 256  ;;  %s1240_s26 = scalar_lea.hbm %s1807_s7, 512 }
 0x1ea   : > { %p1237_p4 = scmp.ne.s32.totalorder %s1704_s17, %s1236_s29  ;;  %p1241_p8 = scmp.lt.u32.totalorder %s1704_s17, %s1807_s7 }
 0x1eb   : > { %p1242_p13 = scmp.lt.u32.totalorder %s1240_s26, %s1236_s29  ;;  %p1244_p7 = scmp.lt.u32.totalorder %s1236_s29, %s1704_s17 }
 0x1ec   : > { %p1238_p9 = pnand %p1237_p4, %p1832_p2 }
 0x1ed   : > { %p1243_p5 = por %p1242_p13, %p1241_p8 }
 0x1ee   : > { %p1239_p11 = pneg %p1238_p9 }
 0x1ef   : > { %p1245_p12 = por %p1244_p7, %p1243_p5 }
 0x1f1   : > { %p1246_p0 = pnand %p1245_p12, %p1239_p11 }
 0x1f3   : > { %1249 = shalt.err (!%p1246_p0)
}
 0x1f4   : > { %s1833_s15 = smov 64   ;;  %s1834_s23 = scalar_lea.sflag [#allocation4], %s1590_s27  ;;  %v650_v41 = vpop.permute.xlu0 %649 }
 0x1f5   : > { %1010 = dma.vmem_to_hbm [thread:$0]  (%p1832_p2), %s1698_s21, 256, %s1704_s17, %s1834_s23, %s1833_s15, %s1833_s15, %s1354_s9  }
 0x1f6   : > { %943 = vst.msk [vmem:[%s1643_s30 + $0x4] sm:$0xf] %vm626_vm2, %v650_v41  ;;  %s743_s19 = sshll.u32 %s1643_s30, 4  ;;  %s1835_s16 = sld [smem:[#allocation18_spill]]  ;;  %s1740_s19 = int_to_ptr.vmem [resolvable:$true] %s743_s19 }
 0x1f7   : > { %s1250_s21 = scalar_lea.vmem %s1740_s19, 256  ;;  %s1356_s17 = smov [#allocation11]  }
 0x1f8   : > { %v665_v42 = vpop.permute.xlu0 %664  ;;  %p1251_p1 = scmp.ne.s32.totalorder %s1740_s19, %s1250_s21  ;;  %s1254_s26 = sshll.u32 %s1356_s17, 4  ;;  %s1255_s26 = int_to_ptr.vmem [resolvable:$false] %s1254_s26 }
 0x1f9   : > { %946 = vst.msk [vmem:[%s1643_s30 + $0x8] sm:$0xf] %vm626_vm2, %v665_v42  ;;  %s1256_s28 = scalar_lea.vmem %s1255_s26, 512  ;;  %p1257_p3 = scmp.lt.s32.totalorder %s1740_s19, %s1255_s26 }
 0x1fa   : > { %p1252_p6 = pnand %p1251_p1, %p1832_p2  ;;  %p1258_p4 = scmp.lt.s32.totalorder %s1256_s28, %s1250_s21 }
 0x1fc   : > { %s1746_s24 = scalar_lea.hbm %s1835_s16, %s1650_s20  ;;  %v680_v43 = vpop.permute.xlu0 %679  ;;  %p1253_p10 = pneg %p1252_p6 }
 0x1fd   : > { %949 = vst.msk [vmem:[%s1643_s30 + $0xc] sm:$0xf] %vm626_vm2, %v680_v43  ;;  %p1259_p9 = por %p1258_p4, %p1257_p3 }
 0x1ff   : > { %p1260_p11 = pnand %p1259_p9, %p1253_p10 }
 0x201   : > { %1263 = shalt.err (!%p1260_p11)
}
 0x202   : > { %s1264_s30 = scalar_lea.hbm %s1746_s24, 256  ;;  %s1268_s29 = scalar_lea.hbm %s1835_s16, 512 }
 0x203   : > { %p1265_p8 = scmp.ne.s32.totalorder %s1746_s24, %s1264_s30  ;;  %p1269_p7 = scmp.lt.u32.totalorder %s1746_s24, %s1835_s16 }
 0x204   : > { %p1270_p12 = scmp.lt.u32.totalorder %s1268_s29, %s1264_s30  ;;  %p1272_p1 = scmp.lt.u32.totalorder %s1264_s30, %s1746_s24 }
 0x205   : > { %p1266_p13 = pnand %p1265_p8, %p1832_p2 }
 0x206   : > { %p1271_p0 = por %p1270_p12, %p1269_p7 }
 0x207   : > { %p1267_p5 = pneg %p1266_p13 }
 0x208   : > { %p1273_p6 = por %p1272_p1, %p1271_p0 }
 0x20a   : > { %p1274_p10 = pnand %p1273_p6, %p1267_p5 }
 0x20c   : > { %1277 = shalt.err (!%p1274_p10)
}
 0x20d   : > { %1012 = dma.vmem_to_hbm [thread:$0]  (%p1832_p2), %s1740_s19, 256, %s1746_s24, %s1668_s12, %s1833_s15, %s1833_s15, %s1354_s9  }
 0x20e PF: > { %s1836_s21 = sld [smem:[#allocation16_spill]]  ;;  %s1837_s26 = sld [smem:[#allocation17_spill]] }
 0x20f   : > { %p1839_p4 = scmp.ge.s32.totalorder %s1340_s14, 2 }
 0x214   : > { %s758_s28 = sand.u32 1, %s1836_s21   ;;  %p1838_p3 = scmp.ne.s32.totalorder %s1837_s26, 0 }
 0x215   : > { %s759_s30 = scalar_lea.sflag [#allocation4], %s758_s28 }
 0x216   : > { %p1028_p9 = pnand %p1839_p4, %p1838_p3 }
 0x218   : > { %1311 = dma.done.wait (!%p1028_p9), %s759_s30, 256  }
 0x219   : > { %1313 = vsyncadd (!%p1028_p9), %s759_s30, 4294967040  ;;  %s1840_s22 = sadd.s32 4294967294, %s1340_s14  }
 0x21a   : > { %s767_s20 = sand.u32 1, %s1840_s22  }
 0x21b   : > { %s768_s23 = scalar_lea.sflag [#allocation10], %s767_s20 }
 0x21c   : > { %1315 = dma.done.wait (!%p1028_p9), %s768_s23, 512  }
 0x21d   : > { %1317 = vsyncadd (!%p1028_p9), %s768_s23, 4294966784  ;;  %s30_s14 = sadd.s32 1, %s1340_s14   ;;  %s1841_s30 = smov %s1324_s10 }
 0x21e   : > { %p27_p2 = scmp.ge.s32.totalorder %s30_s14, 4   ;;  %s1842_s10 = smov %s1328_s11 }
 0x21f   : > { %s1843_s11 = smov %s1547_s25  ;;  %s1844_s12 = smov %s1336_s13 }
 0x220   : > { %s1845_s13 = smov %s1847_s18  ;;  %29 = sbr.rel (!%p27_p2) target bundleno = 11 (0xb), region = 142 }
 0x227   :  { %782 = vsyncpa [#allocation3], 1 }
 0x228   :  { %784 = vsyncpa [#allocation3 + $0x1], 1 }
 0x229   :  { %785 = vsyncpa [#allocation6], 1 }
 0x22a   :  { %786 = vsyncpa [#allocation4], 1 }
 0x22b   :  { %788 = vsyncpa [#allocation4 + $0x1], 1 }
 0x22c   :  { %789 = vsyncpa [#allocation10], 1 }
 0x22d   :  { %791 = vsyncpa [#allocation10 + $0x1], 1 }

// kernel: tpu_custom_call.1
= control target key start
LH: loop header
LB: loop body
LE: loop exit
PB: predicated region body
PF: predicated region fallthrough
CT: control target
= control target key end

     0   :  { %s1800_s0 = inlined_call_operand.hbm [shape: bf16[2,8,32], index: 0, kind: input, shape index: {}]   ;;  %s1801_s1 = inlined_call_operand.hbm [shape: bf16[32,32], index: 1, kind: input, shape index: {}]   ;;  %s1802_s2 = inlined_call_operand.vmem [shape: f32[1,32], index: 2, kind: input, shape index: {}]   ;;  %s1803_s3 = inlined_call_operand.hbm [shape: bf16[32,32], index: 3, kind: input, shape index: {}]   ;;  %s1804_s4 = inlined_call_operand.vmem [shape: f32[1,32], index: 4, kind: input, shape index: {}]   ;;  %s1805_s5 = inlined_call_operand.vmem [shape: bf16[32,32], index: 5, kind: input, shape index: {}]   ;;  %s1806_s6 = inlined_call_operand.vmem [shape: f32[1,32], index: 6, kind: input, shape index: {}]   ;;  %s1807_s7 = inlined_call_operand.hbm [shape: bf16[2,4,8,8], index: 7, kind: output, shape index: {0}]   ;;  %s1808_s8 = inlined_call_operand.hbm [shape: bf16[2,4,8,8], index: 8, kind: output, shape index: {1}]   ;;  %s1809_s9 = inlined_call_operand.hbm [shape: bf16[2,4,8,8], index: 9, kind: output, shape index: {2}]  }
   0x1   :  { %1819 = sst [smem:[#allocation18_spill]] %s1809_s9 }
   0x2   :  { %15 = vsyncpa [#allocation3], 0 }
   0x3   :  { %17 = vsyncpa [#allocation3 + $0x1], 0 }
   0x4   :  { %18 = vsyncpa [#allocation6], 0 }
   0x5   :  { %19 = vsyncpa [#allocation4], 0 }
   0x6   :  { %21 = vsyncpa [#allocation4 + $0x1], 0 }
   0x7   :  { %22 = vsyncpa [#allocation10], 0 }
   0x8   :  { %24 = vsyncpa [#allocation10 + $0x1], 0  ;;  %s1407_s30 = smov 0   ;;  %s1409_s10 = smov 0  }
   0x9   :  { %s1411_s11 = smov 0   ;;  %s1413_s12 = smov 0  }
   0xa   :  { %s1415_s13 = smov 0   ;;  %s1417_s14 = smov 0  }
   0xb LB: > { %1820 = sst [smem:[#allocation16_spill]] %s1320_s30  ;;  %s1438_s15 = sadd.s32 4294967295, %s1340_s14   ;;  %s1340_s14 = sphi %s1417_s14, %s30_s14   ;;  %s1336_s13 = sphi %s1415_s13, %s1845_s13   ;;  %s1332_s12 = sphi %s1413_s12, %s1844_s12   ;;  %s1328_s11 = sphi %s1411_s11, %s1843_s11   ;;  %s1324_s10 = sphi %s1409_s10, %s1842_s10   ;;  %s1320_s30 = sphi %s1407_s30, %s1841_s30  }
   0xc   : > { %s1810_s16 = sadd.s32 4294967294, %s1340_s14   ;;  %p64_p0 = scmp.ne.s32.totalorder %s1324_s10, %s1320_s30 }
   0xd   : > { %p1811_p1 = scmp.eq.s32.totalorder %s1438_s15, 0  ;;  %p222_p3 = scmp.eq.s32.totalorder %s1810_s16, 1 }
   0xe   : > { %p913_p5 = scmp.ge.s32.totalorder %s1340_s14, 1  ;;  %p285_p7 = scmp.lt.s32.totalorder %s1340_s14, 3 }
   0xf   : > { %p1449_p4 = por %p1811_p1, %p64_p0  ;;  %p1454_p6 = por %p222_p3, %p64_p0 }
  0x10   : > { %p1459_p8 = pnand %p913_p5, %p285_p7  ;;  %s1342_s20 = smov [#allocation5]  }
  0x11   : > { %s1821_s17 = scalar_select %p1449_p4, 1, 0 }
  0x12   : > { %s1822_s18 = scalar_select %p1454_p6, 1, 0 }
  0x13   : > { %s297_s21 = sshll.u32 %s1342_s20, 4  ;;  %p1016_p9 = pneg %p1459_p8  ;;  %s1463_s21 = int_to_ptr.vmem [resolvable:$true] %s297_s21 }
  0x14   : > { %1823 = sst [smem:[#allocation17_spill]] %s1822_s18  ;;  %s1343_s23 = smov [#allocation7]  }
  0x15   : > { %p1470_p11 = pnand %p1016_p9, %p1811_p1  ;;  %s313_s24 = sshll.u32 %s1343_s23, 4  ;;  %s1474_s24 = int_to_ptr.vmem [resolvable:$true] %s313_s24 }
  0x16   : > { %s1108_s27 = scalar_lea.hbm %s1801_s1, 256 }
  0x17   : > { %p1109_p12 = scmp.ne.s32.totalorder %s1801_s1, %s1108_s27  ;;  %p1110_p13 = pneg %p1470_p11 }
  0x18   : > { %p1115_p5 = scmp.lt.u32.totalorder %s1108_s27, %s1801_s1 }
  0x19   : > { %p1111_p0 = pnand %p1110_p13, %p1109_p12 }
  0x1b   : > { %p1112_p3 = pneg %p1111_p0 }
  0x1d   : > { %p1117_p7 = pnand %p1115_p5, %p1112_p3 }
  0x1f   : > { %1120 = shalt.err (!%p1117_p7)
}
  0x20   : > { %s1121_s23 = scalar_lea.vmem %s1463_s21, 256  ;;  %p1129_p2 = scmp.lt.s32.totalorder %s1463_s21, %s1463_s21 }
  0x21   : > { %p1122_p9 = scmp.ne.s32.totalorder %s1463_s21, %s1121_s23  ;;  %p1130_p12 = scmp.lt.s32.totalorder %s1121_s23, %s1121_s23 }
  0x23   : > { %p1124_p10 = pnand %p1122_p9, %p1110_p13  ;;  %p1131_p0 = por %p1130_p12, %p1129_p2 }
  0x25   : > { %p1125_p1 = pneg %p1124_p10 }
  0x27   : > { %p1132_p6 = pnand %p1131_p0, %p1125_p1 }
  0x29   : > { %1135 = shalt.err (!%p1132_p6)
}
  0x2a   : > { %s1344_s16 = smov 64   ;;  %s1345_s25 = smov 4  }
  0x2b   : > { %1019 = dma.hbm_to_vmem [thread:$0]  (!%p1470_p11), %s1801_s1, 256, %s1463_s21, [#allocation6], %s1344_s16, %s1344_s16, %s1345_s25  }
  0x2c   : > { %s1136_s20 = scalar_lea.hbm %s1803_s3, 256 }
  0x2d   : > { %p1137_p2 = scmp.ne.s32.totalorder %s1803_s3, %s1136_s20  ;;  %p1143_p10 = scmp.lt.u32.totalorder %s1136_s20, %s1803_s3 }
  0x2f   : > { %p1139_p1 = pnand %p1137_p2, %p1110_p13 }
  0x31   : > { %p1140_p6 = pneg %p1139_p1 }
  0x33   : > { %p1145_p3 = pnand %p1143_p10, %p1140_p6 }
  0x35   : > { %1148 = shalt.err (!%p1145_p3)
}
  0x36   : > { %s1149_s21 = scalar_lea.vmem %s1474_s24, 256  ;;  %p1157_p12 = scmp.lt.s32.totalorder %s1474_s24, %s1474_s24 }
  0x37   : > { %p1150_p5 = scmp.ne.s32.totalorder %s1474_s24, %s1149_s21  ;;  %p1158_p0 = scmp.lt.s32.totalorder %s1149_s21, %s1149_s21 }
  0x39   : > { %p1152_p7 = pnand %p1150_p5, %p1110_p13  ;;  %p1159_p2 = por %p1158_p0, %p1157_p12 }
  0x3b   : > { %p1153_p9 = pneg %p1152_p7 }
  0x3d   : > { %p1160_p1 = pnand %p1159_p2, %p1153_p9 }
  0x3f   : > { %1163 = shalt.err (!%p1160_p1)
}
  0x40   : > { %1022 = dma.hbm_to_vmem [thread:$0]  (!%p1470_p11), %s1803_s3, 256, %s1474_s24, [#allocation6], %s1344_s16, %s1344_s16, %s1345_s25  }
  0x41   : > { %s42_s18 = sadd.s32 1, %s1336_s13  ;;  %s51_s26 = sadd.s32 1, %s1328_s11 }
  0x42   : > { %p44_p13 = scmp.ge.s32.totalorder %s42_s18, 2  ;;  %p58_p6 = scmp.ne.s32.totalorder %s1328_s11, %s1324_s10 }
  0x43   : > { %p59_p10 = scmp.eq.s32.totalorder %s1340_s14, 0  ;;  %p1039_p3 = scmp.lt.s32.totalorder %s1340_s14, 2 }
  0x44   : > { %s1847_s18 = smov (%p44_p13, %s42_s18), 0  ;;  %p1826_p7 = scmp.eq.s32.totalorder %s1438_s15, 1 }
  0x45   : > { %p60_p5 = por %p59_p10, %p58_p6  ;;  %s46_s27 = ssub.s32 %s1336_s13, %s1847_s18 }
  0x46   : > { %p1538_p9 = por %p1826_p7, %p58_p6  ;;  %s336_s28 = sand.u32 1, %s1328_s11  }
  0x47   : > { %p49_p12 = scmp.eq.s32.totalorder %s46_s27, 0  ;;  %s917_s24 = sshll.u32 %s336_s28, 2 }
  0x48   : > { %s1827_s22 = scalar_select %p1538_p9, 1, 0 }
  0x49   : > { %s918_s16 = sshll.u32 %s1336_s13, 6  ;;  %s340_s21 = scalar_lea.vmem [#allocation2], %s917_s24 }
  0x4a   : > { %s1547_s25 = scalar_select %p49_p12, %s1328_s11, %s51_s26  }
  0x4b   : > { %s1552_s23 = scalar_lea.hbm %s1800_s0, %s918_s16  ;;  %s348_s9 = sshll.u32 %s340_s21, 4  ;;  %s1560_s9 = int_to_ptr.vmem [resolvable:$true] %s348_s9 }
  0x4c   : > { %p1556_p11 = pnand %p1039_p3, %p60_p5  ;;  %s337_s26 = scalar_lea.sflag [#allocation3], %s336_s28 }
  0x4d   : > { %s1164_s27 = scalar_lea.hbm %s1552_s23, 64  ;;  %s1169_s29 = scalar_lea.hbm %s1800_s0, 128 }
  0x4e   : > { %p1165_p0 = scmp.ne.s32.totalorder %s1552_s23, %s1164_s27  ;;  %p1166_p2 = pneg %p1556_p11 }
  0x4f   : > { %p1170_p6 = scmp.lt.u32.totalorder %s1552_s23, %s1800_s0  ;;  %p1171_p10 = scmp.lt.u32.totalorder %s1169_s29, %s1164_s27 }
  0x50   : > { %p1167_p1 = pnand %p1166_p2, %p1165_p0  ;;  %p1173_p5 = scmp.lt.u32.totalorder %s1164_s27, %s1552_s23 }
  0x51   : > { %p1172_p3 = por %p1171_p10, %p1170_p6 }
  0x52   : > { %p1168_p13 = pneg %p1167_p1 }
  0x53   : > { %p1174_p7 = por %p1173_p5, %p1172_p3 }
  0x55   : > { %p1175_p12 = pnand %p1174_p7, %p1168_p13 }
  0x57   : > { %1178 = shalt.err (!%p1175_p12)
}
  0x58   : > { %s1179_s28 = scalar_lea.vmem %s1560_s9, 64  ;;  %s1346_s24 = smov [#allocation2]  }
  0x59   : > { %p1180_p0 = scmp.ne.s32.totalorder %s1560_s9, %s1179_s28  ;;  %s1184_s16 = sshll.u32 %s1346_s24, 4  ;;  %s1185_s16 = int_to_ptr.vmem [resolvable:$false] %s1184_s16 }
  0x5a   : > { %s1186_s20 = scalar_lea.vmem %s1185_s16, 128  ;;  %p1187_p4 = scmp.lt.s32.totalorder %s1560_s9, %s1185_s16 }
  0x5b   : > { %p1182_p1 = pnand %p1180_p0, %p1166_p2  ;;  %p1188_p6 = scmp.lt.s32.totalorder %s1186_s20, %s1179_s28 }
  0x5d   : > { %p1183_p9 = pneg %p1182_p1  ;;  %p1189_p10 = por %p1188_p6, %p1187_p4 }
  0x5f   : > { %p1190_p3 = pnand %p1189_p10, %p1183_p9 }
  0x61   : > { %1193 = shalt.err (!%p1190_p3)
}
  0x62   : > { %1026 = dma.hbm_to_vmem [thread:$0]  (!%p1556_p11), %s1552_s23, 64, %s1560_s9, %s337_s26  }
  0x63   : > { %357 = sbr.rel (%p1459_p8) target bundleno = 526 (0x20e), region = 48  ;;  %s1590_s27 = sand.u32 (!%p1459_p8), 1, %s1324_s10  }
  0x64   : > { %s920_s29 = sshll.u32 (!%p1459_p8), %s1590_s27, 2  ;;  %s360_s21 = scalar_lea.sflag (!%p1459_p8), [#allocation3], %s1590_s27 }
  0x65   : > { %s363_s28 = scalar_lea.vmem (!%p1459_p8), [#allocation2], %s920_s29  ;;  %p1829_p4 = scmp.ne.s32.totalorder (!%p1459_p8), %s1821_s17, 0 }
  0x6a   : > { %1303 = dma.done.wait (%p1829_p4), %s360_s21, 64  }
  0x6b   : > { %1305 = vsyncadd (%p1829_p4), %s360_s21, 4294967232  ;;  %p1830_p9 = scmp.eq.s32.totalorder %s1438_s15, 0 }
  0x6d   : > { %1307 = dma.done.wait (%p1830_p9), [#allocation6], 512   ;;  %p1831_p11 = pmov %p1830_p9 }
  0x6e   : > { %v1347_v0 = vmov 0.0   ;;  %vm1348_vm0 = vmmov 0   ;;  %vm439_vm1 = vcmask 261120   ;;  %v1102_v1 = vld [vmem:[#allocation5] sm:$0xff]   ;;  %v1103_v2 = vld [vmem:[#allocation7] sm:$0xff]   ;;  %v1104_v5 = vld [vmem:[#allocation5 + $0x8] sm:$0xff]  }
  0x6f   : > { %1309 = vsyncadd (%p1831_p11), [#allocation6], 4294966784  ;;  %976 = vmatprep.subr.bf16.mxu0 %v1347_v0  ;;  %984 = vmatprep.subr.bf16.mxu1 %v1347_v0  ;;  %v444_v3 = vsel %vm439_vm1, %v1102_v1, 0  ;;  %v512_v4 = vsel %vm439_vm1, %v1103_v2, 0  ;;  %v1105_v6 = vld [vmem:[#allocation7 + $0x8] sm:$0xff]   ;;  %v447_v7 = vsel %vm439_vm1, %v1104_v5, 0 }
  0x70   : > { %980 = vmatprep.mubr.msk.bf16.mxu0 %vm1348_vm0, %v1347_v0  ;;  %988 = vmatprep.mubr.msk.bf16.mxu1 %vm1348_vm0, %v1347_v0  ;;  %v515_v8 = vsel %vm439_vm1, %v1105_v6, 0  ;;  %v1106_v9 = vld [vmem:[%s1805_s5] sm:$0xff]   ;;  %v417_v10 = vld [vmem:[%s363_s28] sm:$0xf]  ;;  %v1107_v12 = vld [vmem:[%s1805_s5 + $0x8] sm:$0xff]   ;;  %s1624_s24 = sshll.u32 %s1590_s27, 4 }
  0x71   : > { %977 = vmatpush3.bf16.xpose.msra.mxu0 %v444_v3  ;;  %985 = vmatpush3.bf16.xpose.msra.mxu1 %v512_v4  ;;  %v580_v11 = vsel %vm439_vm1, %v1106_v9, 0  ;;  %v583_v13 = vsel %vm439_vm1, %v1107_v12, 0  ;;  %v926_v14 = vld [vmem:[%s1802_s2] ss:$0 sm:$0xff]  ;;  %vm626_vm2 = vcmask 60416   ;;  %s1630_s29 = scalar_lea.vmem [#allocation8], %s1624_s24 }
  0x72   : > { %978 = vmatprep.subr.bf16.mxu0 %v1347_v0  ;;  %986 = vmatprep.subr.bf16.mxu1 %v1347_v0  ;;  %v930_v15 = vld [vmem:[%s1804_s4] ss:$0 sm:$0xff]  ;;  %s1635_s21 = scalar_lea.vmem [#allocation9], %s1624_s24  ;;  %s1349_s28 = smov 104  }
  0x73   : > { %s1350_s17 = smov 120   ;;  %s1351_s19 = smov 112   ;;  %v934_v28 = vld [vmem:[%s1806_s6] ss:$0 sm:$0xff] }
  0x74   : > { %s1643_s30 = scalar_lea.vmem [#allocation11], %s1624_s24  ;;  %s726_s26 = sshll.u32 %s1635_s21, 4  ;;  %s1652_s26 = int_to_ptr.vmem [resolvable:$true] %s726_s26 }
  0x75   : > { %s689_s16 = sand.u32 1, %s1438_s15   ;;  %s1650_s20 = sshll.u32 %s1332_s12, 8 }
  0x76   : > { %s1668_s12 = scalar_lea.sflag [#allocation10], %s689_s16  ;;  %s1194_s15 = scalar_lea.vmem %s1652_s26, 256 }
  0x77   : > { %p1195_p8 = scmp.ne.s32.totalorder %s1652_s26, %s1194_s15  ;;  %p1832_p2 = scmp.ne.s32.totalorder %s1827_s22, 0 }
  0x79   : > { %979 = vmatpush3.bf16.xpose.msra.mxu0 %v447_v7  ;;  %987 = vmatpush3.bf16.xpose.msra.mxu1 %v515_v8  ;;  %p1196_p13 = pnand %p1195_p8, %p1832_p2 }
  0x7a   : > { %992 = vmatprep.subr.bf16.mxu0 %v1347_v0 }
  0x7b   : > { %p1197_p5 = pneg %p1196_p13 }
  0x80   : > { %981 = vmatmul.mubr.msk.bf16.vlgmr.msra.gmra.mrb[0].mxu0 %vm439_vm1, %v417_v10  ;;  %989 = vmatmul.mubr.msk.bf16.vlgmr.msra.gmra.mrb[0].mxu1 %vm439_vm1, %v417_v10 }
  0x81   : > { %993 = vmatpush3.bf16.xpose.msra.mxu0 %v580_v11  ;;  %996 = vmatprep.mubr.msk.bf16.mxu0 %vm1348_vm0, %v1347_v0 }
  0x82   : > { %994 = vmatprep.subr.bf16.mxu0 %v1347_v0 }
  0x89   : > { %995 = vmatpush3.bf16.xpose.msra.mxu0 %v583_v13 }
  0x90   : > { %997 = vmatmul.mubr.msk.bf16.vlgmr.msra.gmra.mrb[4].mxu0 %vm439_vm1, %v417_v10 }
 0x153   : > { %v483_v16 = vpop.f32.mrb[0].mxu0  ;;  %v551_v18 = vpop.f32.mrb[0].mxu1 }
 0x154   : > { %v484_v17 = vadd.f32 %v926_v14, %v483_v16  ;;  %v982_v19 = vpop.f32.mrb[1].mxu0  ;;  %v552_v20 = vadd.f32 %v930_v15, %v551_v18  ;;  %v990_v22 = vpop.f32.mrb[1].mxu1 }
 0x155   : > { %v486_v21 = vpop.f32.mrb[2].mxu0  ;;  %v554_v25 = vpop.f32.mrb[2].mxu1 }
 0x156   : > { %v489_v23 = vpack.c.bf16 %v484_v17, %v484_v17  ;;  %v983_v24 = vpop.f32.mrb[3].mxu0  ;;  %v557_v26 = vpack.c.bf16 %v552_v20, %v552_v20  ;;  %v991_v27 = vpop.f32.mrb[3].mxu1 }
 0x158   : > { %627 = vst.msk [vmem:[%s1630_s29] sm:$0xf] %vm626_vm2, %v489_v23  ;;  %628 = vst.msk [vmem:[%s1635_s21] sm:$0xf] %vm626_vm2, %v557_v26  ;;  %674 = vrot.lane.b32.xlu1 %v557_v26, %s1349_s28  ;;  %641 = vrot.lane.b32.xlu0 %v557_v26, %s1350_s17 }
 0x15c   : > { %633 = vrot.lane.b32.xlu1 %v489_v23, %s1350_s17  ;;  %659 = vrot.lane.b32.xlu0 %v557_v26, %s1351_s19 }
 0x160   : > { %654 = vrot.lane.b32.xlu1 %v489_v23, %s1351_s19 }
 0x163   : > { %v619_v29 = vpop.f32.mrb[4].mxu0 }
 0x164   : > { %v620_v30 = vadd.f32 %v934_v28, %v619_v29  ;;  %v998_v31 = vpop.f32.mrb[5].mxu0  ;;  %669 = vrot.lane.b32.xlu1 %v489_v23, %s1349_s28 }
 0x165   : > { %v622_v32 = vpop.f32.mrb[6].mxu0 }
 0x166   : > { %v625_v33 = vpack.c.bf16 %v620_v30, %v620_v30  ;;  %v999_v34 = vpop.f32.mrb[7].mxu0 }
 0x168   : > { %629 = vst.msk [vmem:[%s1643_s30] sm:$0xf] %vm626_vm2, %v625_v33  ;;  %649 = vrot.lane.b32.xlu0 %v625_v33, %s1350_s17 }
 0x16c   : > { %664 = vrot.lane.b32.xlu0 %v625_v33, %s1351_s19  ;;  %s1352_s19 = smov [#allocation9]  }
 0x16d   : > { %s1198_s23 = sshll.u32 %s1352_s19, 4  ;;  %s1199_s23 = int_to_ptr.vmem [resolvable:$false] %s1198_s23 }
 0x16e   : > { %s1200_s9 = scalar_lea.vmem %s1199_s23, 512  ;;  %p1201_p7 = scmp.lt.s32.totalorder %s1652_s26, %s1199_s23 }
 0x16f   : > { %p1202_p12 = scmp.lt.s32.totalorder %s1200_s9, %s1194_s15 }
 0x170   : > { %679 = vrot.lane.b32.xlu0 %v625_v33, %s1349_s28  ;;  %s1662_s28 = scalar_lea.hbm %s1808_s8, %s1650_s20 }
 0x171   : > { %p1203_p0 = por %p1202_p12, %p1201_p7 }
 0x173   : > { %p1204_p1 = pnand %p1203_p0, %p1197_p5 }
 0x1ca   : > { %v675_v35 = vpop.permute.xlu1 %674  ;;  %v642_v36 = vpop.permute.xlu0 %641 }
 0x1cb   : > { %948 = vst.msk [vmem:[%s1635_s21 + $0xc] sm:$0xf] %vm626_vm2, %v675_v35  ;;  %941 = vst.msk [vmem:[%s1635_s21 + $0x4] sm:$0xf] %vm626_vm2, %v642_v36 }
 0x1ce   : > { %v634_v37 = vpop.permute.xlu1 %633  ;;  %v660_v38 = vpop.permute.xlu0 %659 }
 0x1cf   : > { %939 = vst.msk [vmem:[%s1630_s29 + $0x4] sm:$0xf] %vm626_vm2, %v634_v37  ;;  %945 = vst.msk [vmem:[%s1635_s21 + $0x8] sm:$0xf] %vm626_vm2, %v660_v38 }
 0x1d0   : > { %1207 = shalt.err (!%p1204_p1)
}
 0x1d1   : > { %s1208_s21 = scalar_lea.hbm %s1662_s28, 256  ;;  %s1212_s17 = scalar_lea.hbm %s1808_s8, 512 }
 0x1d2   : > { %p1209_p6 = scmp.ne.s32.totalorder %s1662_s28, %s1208_s21  ;;  %p1213_p4 = scmp.lt.u32.totalorder %s1662_s28, %s1808_s8 }
 0x1d3   : > { %p1214_p9 = scmp.lt.u32.totalorder %s1212_s17, %s1208_s21  ;;  %p1216_p8 = scmp.lt.u32.totalorder %s1208_s21, %s1662_s28 }
 0x1d4   : > { %p1210_p10 = pnand %p1209_p6, %p1832_p2 }
 0x1d5   : > { %p1215_p11 = por %p1214_p9, %p1213_p4 }
 0x1d6   : > { %p1211_p3 = pneg %p1210_p10 }
 0x1d7   : > { %p1217_p13 = por %p1216_p8, %p1215_p11 }
 0x1d9   : > { %p1218_p5 = pnand %p1217_p13, %p1211_p3 }
 0x1db   : > { %1221 = shalt.err (!%p1218_p5)
}
 0x1dc   : > { %s1817_s15 = smov 64   ;;  %s1354_s9 = smov 4   ;;  %v655_v39 = vpop.permute.xlu1 %654 }
 0x1dd   : > { %1011 = dma.vmem_to_hbm [thread:$0]  (%p1832_p2), %s1652_s26, 256, %s1662_s28, %s1668_s12, %s1817_s15, %s1817_s15, %s1354_s9  }
 0x1de   : > { %s709_s21 = sshll.u32 %s1630_s29, 4  ;;  %944 = vst.msk [vmem:[%s1630_s29 + $0x8] sm:$0xf] %vm626_vm2, %v655_v39  ;;  %s1704_s17 = scalar_lea.hbm %s1807_s7, %s1650_s20  ;;  %s1698_s21 = int_to_ptr.vmem [resolvable:$true] %s709_s21 }
 0x1df   : > { %s1222_s23 = scalar_lea.vmem %s1698_s21, 256  ;;  %s1355_s26 = smov [#allocation8]  }
 0x1e0   : > { %v670_v40 = vpop.permute.xlu1 %669  ;;  %p1223_p7 = scmp.ne.s32.totalorder %s1698_s21, %s1222_s23  ;;  %s1226_s28 = sshll.u32 %s1355_s26, 4  ;;  %s1227_s28 = int_to_ptr.vmem [resolvable:$false] %s1226_s28 }
 0x1e1   : > { %947 = vst.msk [vmem:[%s1630_s29 + $0xc] sm:$0xf] %vm626_vm2, %v670_v40  ;;  %s1228_s15 = scalar_lea.vmem %s1227_s28, 512  ;;  %p1229_p1 = scmp.lt.s32.totalorder %s1698_s21, %s1227_s28 }
 0x1e2   : > { %p1224_p12 = pnand %p1223_p7, %p1832_p2  ;;  %p1230_p6 = scmp.lt.s32.totalorder %s1228_s15, %s1222_s23 }
 0x1e4   : > { %p1225_p0 = pneg %p1224_p12  ;;  %p1231_p10 = por %p1230_p6, %p1229_p1 }
 0x1e6   : > { %p1232_p3 = pnand %p1231_p10, %p1225_p0 }
 0x1e8   : > { %1235 = shalt.err (!%p1232_p3)
}
 0x1e9   : > { %s1236_s29 = scalar_lea.hbm %s1704_s17, 256  ;;  %s1240_s26 = scalar_lea.hbm %s1807_s7, 512 }
 0x1ea   : > { %p1237_p4 = scmp.ne.s32.totalorder %s1704_s17, %s1236_s29  ;;  %p1241_p8 = scmp.lt.u32.totalorder %s1704_s17, %s1807_s7 }
 0x1eb   : > { %p1242_p13 = scmp.lt.u32.totalorder %s1240_s26, %s1236_s29  ;;  %p1244_p7 = scmp.lt.u32.totalorder %s1236_s29, %s1704_s17 }
 0x1ec   : > { %p1238_p9 = pnand %p1237_p4, %p1832_p2 }
 0x1ed   : > { %p1243_p5 = por %p1242_p13, %p1241_p8 }
 0x1ee   : > { %p1239_p11 = pneg %p1238_p9 }
 0x1ef   : > { %p1245_p12 = por %p1244_p7, %p1243_p5 }
 0x1f1   : > { %p1246_p0 = pnand %p1245_p12, %p1239_p11 }
 0x1f3   : > { %1249 = shalt.err (!%p1246_p0)
}
 0x1f4   : > { %s1833_s15 = smov 64   ;;  %s1834_s23 = scalar_lea.sflag [#allocation4], %s1590_s27  ;;  %v650_v41 = vpop.permute.xlu0 %649 }
 0x1f5   : > { %1010 = dma.vmem_to_hbm [thread:$0]  (%p1832_p2), %s1698_s21, 256, %s1704_s17, %s1834_s23, %s1833_s15, %s1833_s15, %s1354_s9  }
 0x1f6   : > { %943 = vst.msk [vmem:[%s1643_s30 + $0x4] sm:$0xf] %vm626_vm2, %v650_v41  ;;  %s743_s19 = sshll.u32 %s1643_s30, 4  ;;  %s1835_s16 = sld [smem:[#allocation18_spill]]  ;;  %s1740_s19 = int_to_ptr.vmem [resolvable:$true] %s743_s19 }
 0x1f7   : > { %s1250_s21 = scalar_lea.vmem %s1740_s19, 256  ;;  %s1356_s17 = smov [#allocation11]  }
 0x1f8   : > { %v665_v42 = vpop.permute.xlu0 %664  ;;  %p1251_p1 = scmp.ne.s32.totalorder %s1740_s19, %s1250_s21  ;;  %s1254_s26 = sshll.u32 %s1356_s17, 4  ;;  %s1255_s26 = int_to_ptr.vmem [resolvable:$false] %s1254_s26 }
 0x1f9   : > { %946 = vst.msk [vmem:[%s1643_s30 + $0x8] sm:$0xf] %vm626_vm2, %v665_v42  ;;  %s1256_s28 = scalar_lea.vmem %s1255_s26, 512  ;;  %p1257_p3 = scmp.lt.s32.totalorder %s1740_s19, %s1255_s26 }
 0x1fa   : > { %p1252_p6 = pnand %p1251_p1, %p1832_p2  ;;  %p1258_p4 = scmp.lt.s32.totalorder %s1256_s28, %s1250_s21 }
 0x1fc   : > { %s1746_s24 = scalar_lea.hbm %s1835_s16, %s1650_s20  ;;  %v680_v43 = vpop.permute.xlu0 %679  ;;  %p1253_p10 = pneg %p1252_p6 }
 0x1fd   : > { %949 = vst.msk [vmem:[%s1643_s30 + $0xc] sm:$0xf] %vm626_vm2, %v680_v43  ;;  %p1259_p9 = por %p1258_p4, %p1257_p3 }
 0x1ff   : > { %p1260_p11 = pnand %p1259_p9, %p1253_p10 }
 0x201   : > { %1263 = shalt.err (!%p1260_p11)
}
 0x202   : > { %s1264_s30 = scalar_lea.hbm %s1746_s24, 256  ;;  %s1268_s29 = scalar_lea.hbm %s1835_s16, 512 }
 0x203   : > { %p1265_p8 = scmp.ne.s32.totalorder %s1746_s24, %s1264_s30  ;;  %p1269_p7 = scmp.lt.u32.totalorder %s1746_s24, %s1835_s16 }
 0x204   : > { %p1270_p12 = scmp.lt.u32.totalorder %s1268_s29, %s1264_s30  ;;  %p1272_p1 = scmp.lt.u32.totalorder %s1264_s30, %s1746_s24 }
 0x205   : > { %p1266_p13 = pnand %p1265_p8, %p1832_p2 }
 0x206   : > { %p1271_p0 = por %p1270_p12, %p1269_p7 }
 0x207   : > { %p1267_p5 = pneg %p1266_p13 }
 0x208   : > { %p1273_p6 = por %p1272_p1, %p1271_p0 }
 0x20a   : > { %p1274_p10 = pnand %p1273_p6, %p1267_p5 }
 0x20c   : > { %1277 = shalt.err (!%p1274_p10)
}
 0x20d   : > { %1012 = dma.vmem_to_hbm [thread:$0]  (%p1832_p2), %s1740_s19, 256, %s1746_s24, %s1668_s12, %s1833_s15, %s1833_s15, %s1354_s9  }
 0x20e PF: > { %s1836_s21 = sld [smem:[#allocation16_spill]]  ;;  %s1837_s26 = sld [smem:[#allocation17_spill]] }
 0x20f   : > { %p1839_p4 = scmp.ge.s32.totalorder %s1340_s14, 2 }
 0x214   : > { %s758_s28 = sand.u32 1, %s1836_s21   ;;  %p1838_p3 = scmp.ne.s32.totalorder %s1837_s26, 0 }
 0x215   : > { %s759_s30 = scalar_lea.sflag [#allocation4], %s758_s28 }
 0x216   : > { %p1028_p9 = pnand %p1839_p4, %p1838_p3 }
 0x218   : > { %1311 = dma.done.wait (!%p1028_p9), %s759_s30, 256  }
 0x219   : > { %1313 = vsyncadd (!%p1028_p9), %s759_s30, 4294967040  ;;  %s1840_s22 = sadd.s32 4294967294, %s1340_s14  }
 0x21a   : > { %s767_s20 = sand.u32 1, %s1840_s22  }
 0x21b   : > { %s768_s23 = scalar_lea.sflag [#allocation10], %s767_s20 }
 0x21c   : > { %1315 = dma.done.wait (!%p1028_p9), %s768_s23, 512  }
 0x21d   : > { %1317 = vsyncadd (!%p1028_p9), %s768_s23, 4294966784  ;;  %s30_s14 = sadd.s32 1, %s1340_s14   ;;  %s1841_s30 = smov %s1324_s10 }
 0x21e   : > { %p27_p2 = scmp.ge.s32.totalorder %s30_s14, 4   ;;  %s1842_s10 = smov %s1328_s11 }
 0x21f   : > { %s1843_s11 = smov %s1547_s25  ;;  %s1844_s12 = smov %s1336_s13 }
 0x220   : > { %s1845_s13 = smov %s1847_s18  ;;  %29 = sbr.rel (!%p27_p2) target bundleno = 11 (0xb), region = 142 }
 0x227   :  { %782 = vsyncpa [#allocation3], 1 }
 0x228   :  { %784 = vsyncpa [#allocation3 + $0x1], 1 }
 0x229   :  { %785 = vsyncpa [#allocation6], 1 }
 0x22a   :  { %786 = vsyncpa [#allocation4], 1 }
 0x22b   :  { %788 = vsyncpa [#allocation4 + $0x1], 1 }
 0x22c   :  { %789 = vsyncpa [#allocation10], 1 }
 0x22d   :  { %791 = vsyncpa [#allocation10 + $0x1], 1 }

</bundles_post_ra>
